<compile_context>
chip_gen: v5e
topology: v5e:2x2
jax: 0.10.0
libtpu: 0.0.40
codegen_flags: <defaults>
</compile_context>

<pallas_src>
import jax
import jax.numpy as jnp
from jax.experimental import pallas as pl
from jax.experimental.pallas import tpu as pltpu

CIN, COUT, K = 24, 96, 3
H28, W112 = 28, 112               # the (28, 112) "image" the module convolves over
L = H28 * W112                    # 3136 output spatial positions per channel
LPAD = (H28 + 2) * W112           # 3360 flattened length of the H-padded input
KCIN = K * CIN                    # 72 fused contraction size

# shift_direction in the torch module is (random.random() > 0.5)*2 - 1 (host-side
# RNG at construction time); fixed deterministically to +1 here.
SHIFT_DIRECTION = 1


def _num_output_blocks():
    """1 grid step on single-TC chips (v5e/v6e); 2 parallel C_out blocks only on
    dual-TensorCore generations (v4 / v7x). Safe fallback is 1 (always correct)."""
    try:
        kind = jax.devices()[0].device_kind.lower()
        if ("v4" in kind) or ("v7" in kind) or ("7x" in kind):
            return 2
    except Exception:
        pass
    return 1


N_BLOCKS = _num_output_blocks()
COUT_BLK = COUT // N_BLOCKS


def conv_kernel(w_ref, a_ref, o_ref):
    """w_ref: (COUT_BLK, 72)  conv weights, columns ordered (tap k, c_in j)
       a_ref: (24, 3360)      rolled + H-padded input, flattened
       o_ref: (COUT_BLK, 3136) output block.

       In-VMEM im2col: tap k of the conv is the lane window [k*112, k*112+3136)
       of the padded flat input, so the (72, 3136) slab is built with three
       VMEM slices stacked along (8-aligned) sublane groups — never touching
       HBM — followed by a single fused MXU matmul with f32 accumulation."""
    a = a_ref[...]                                                  # (24, 3360)
    slab = jnp.concatenate(
        [a[:, k * W112: k * W112 + L] for k in range(K)], axis=0)   # (72, 3136)
    o_ref[...] = jnp.dot(w_ref[...], slab,
                         preferred_element_type=jnp.float32)


_conv = pl.pallas_call(
    conv_kernel,
    out_shape=jax.ShapeDtypeStruct((COUT, L), jnp.float32),
    grid=(N_BLOCKS,),
    in_specs=[
        pl.BlockSpec((COUT_BLK, KCIN), lambda i: (i, 0)),   # weights split over C_out
        pl.BlockSpec((CIN, LPAD), lambda i: (0, 0)),        # padded input: resident
    ],
    out_specs=pl.BlockSpec((COUT_BLK, L), lambda i: (i, 0)),
    compiler_params=pltpu.CompilerParams(
        dimension_semantics=("parallel",),                  # dual-TC chips: 1 block per TC
        vmem_limit_bytes=32 * 1024 * 1024,
    ),
    cost_estimate=pl.CostEstimate(
        flops=2 * COUT * KCIN * L,                                   # ~43.4 MFLOP
        transcendentals=0,
        bytes_accessed=(CIN * LPAD + COUT * KCIN + COUT * L) * 4,    # ~1.55 MB
    ),
)


@jax.jit
def forward(x, w):
    """x: (1, 24, 56, 56) float32 (NCHW), w: (96, 24, 3) float32."""
    # ---- layout-only prep (one small fused XLA pass, ~0.6 MB HBM) ----
    t = x.reshape(CIN, H28, 2, 56)               # metadata-only view of the NCHW input
    t = jnp.roll(t, SHIFT_DIRECTION, axis=1)     # module's pre-roll along the 28-axis
    # Fold the module's post-conv roll (axis=3 of the (1,96,56,56) output) onto the
    # input: the conv only mixes the 28-axis, so rolling the inner 56-wide axis
    # before the conv is identical to rolling the output after it.
    t = jnp.roll(t, SHIFT_DIRECTION, axis=3)
    t = jnp.pad(t, ((0, 0), (1, 1), (0, 0), (0, 0)))   # unfold's H padding -> (24, 30, 2, 56)
    a = t.reshape(CIN, LPAD)                     # contiguous flatten -> (24, 3360)

    # weight laid out to match the slab row order (tap-major, then c_in):
    # (96, 24, 3) -> (96, 3, 24) -> (96, 72)   [tiny, ~28 KB]
    w2 = jnp.transpose(w, (0, 2, 1)).reshape(COUT, KCIN)

    # ---- hot path: single fused conv-as-matmul in Pallas ----
    out = _conv(w2, a)                           # (96, 3136)

    # metadata-only reshape back to NCHW; no post-kernel data movement.
    return out.reshape(1, COUT, 56, 56)


@jax.jit
def reference(x, w):
    """Pure-JAX replication of the exact torch forward (for verification)."""
    t = x.reshape(1, CIN, H28, 2, 56)
    t = jnp.roll(t, SHIFT_DIRECTION, axis=2)
    t = t.reshape(1, CIN, H28, W112)
    tp = jnp.pad(t, ((0, 0), (0, 0), (1, 1), (0, 0)))
    # unfold (3,1), padding (1,0): patches[(c,k), h, w] = tp[c, h+k, w]
    patches = jnp.stack([tp[:, :, k:k + H28, :] for k in range(K)], axis=2)
    t2 = patches.reshape(1, CIN, K, H28, 2, 56)
    t3 = jnp.einsum('mjknol,ijk->minol', t2, w,
                    precision=jax.lax.Precision.HIGHEST)
    y = t3.reshape(1, COUT, 56, 56)
    y = jnp.roll(y, SHIFT_DIRECTION, axis=3)
    return y


if __name__ == "__main__":
    key = jax.random.PRNGKey(0)
    kx, kw = jax.random.split(key)
    # Input shape is fixed by the module's hard-coded reshape: (1, 24, 56, 56).
    x = jax.random.normal(kx, (1, CIN, 56, 56), dtype=jnp.float32)
    # Deterministic stand-in for torch.randn([96, 24, 3]).
    w = jax.random.normal(kw, (COUT, CIN, K), dtype=jnp.float32)

    y = forward(x, w)
    jax.block_until_ready(y)

    y_ref = reference(x, w)
    assert y.shape == (1, COUT, 56, 56)
    # Tolerance accommodates MXU multi-pass f32 precision differences between the
    # Pallas dot and the XLA reference einsum; any roll/indexing/weight-order bug
    # would produce O(1)-O(10) errors at thousands of positions.
    assert jnp.allclose(y, y_ref, atol=2e-2, rtol=2e-2), "mismatch vs JAX reference"

    print("KERNEL_OK")
</pallas_src>

<mosaic_0001>
module attributes {stable_mosaic.version = 11 : i64} {
  func.func @conv_kernel(%arg0: i32, %arg1: memref<96x72xf32, #tpu.memory_space<vmem>>, %arg2: memref<24x3360xf32, #tpu.memory_space<vmem>>, %arg3: memref<96x3136xf32, #tpu.memory_space<vmem>>) attributes {dimension_semantics = [#tpu.dimension_semantics<parallel>], iteration_bounds = array<i64: 1>, scalar_prefetch = 0 : i64, scratch_operands = 0 : i64, tpu.core_type = #tpu.core_type<tc>, window_params = [{transform_indices = @transform_0, window_bounds = array<i64: 96, 72>}, {pipeline_mode = #tpu.pipeline_mode<synchronous>, transform_indices = @transform_1, window_bounds = array<i64: 24, 3360>}, {transform_indices = @transform_2, window_bounds = array<i64: 96, 3136>}]} {
    %c0 = arith.constant 0 : index
    %c0_0 = arith.constant 0 : index
    %0 = vector.load %arg2[%c0, %c0_0] : memref<24x3360xf32, #tpu.memory_space<vmem>>, vector<24x3360xf32>
    %1 = vector.extract_strided_slice %0 {offsets = [0, 0], sizes = [24, 3136], strides = [1, 1]} : vector<24x3360xf32> to vector<24x3136xf32>
    %2 = vector.extract_strided_slice %0 {offsets = [0, 112], sizes = [24, 3136], strides = [1, 1]} : vector<24x3360xf32> to vector<24x3136xf32>
    %3 = vector.extract_strided_slice %0 {offsets = [0, 224], sizes = [24, 3136], strides = [1, 1]} : vector<24x3360xf32> to vector<24x3136xf32>
    %4 = tpu.concatenate %1, %2, %3 in 0 : vector<24x3136xf32>, vector<24x3136xf32>, vector<24x3136xf32> -> vector<72x3136xf32>
    %c0_1 = arith.constant 0 : index
    %c0_2 = arith.constant 0 : index
    %5 = vector.load %arg1[%c0_1, %c0_2] : memref<96x72xf32, #tpu.memory_space<vmem>>, vector<96x72xf32>
    %cst = arith.constant dense<0.000000e+00> : vector<96x3136xf32>
    %6 = tpu.matmul %5, %4, %cst {dimension_numbers = #tpu.dot_dimension_numbers<[1], [0], [0], [1], [0, 0, 1, 1], [], []>} : vector<96x72xf32>, vector<72x3136xf32>, vector<96x3136xf32> -> vector<96x3136xf32>
    %c0_3 = arith.constant 0 : index
    %c0_4 = arith.constant 0 : index
    %7 = vector.load %arg3[%c0_3, %c0_4] : memref<96x3136xf32, #tpu.memory_space<vmem>>, vector<96x3136xf32>
    tpu.vector_store %arg3[%c0_3, %c0_4], %6 {strides = array<i32>} : memref<96x3136xf32, #tpu.memory_space<vmem>>, vector<96x3136xf32>,
    return
  }
  func.func @transform_0(%arg0: i32) -> (i32, i32) {
    %c0_i32 = arith.constant 0 : i32
    %c0_i32_0 = arith.constant 0 : i32
    return %arg0, %c0_i32 : i32, i32
  }
  func.func @transform_1(%arg0: i32) -> (i32, i32) {
    %c0_i32 = arith.constant 0 : i32
    %c0_i32_0 = arith.constant 0 : i32
    %c0_i32_1 = arith.constant 0 : i32
    return %c0_i32, %c0_i32_0 : i32, i32
  }
  func.func @transform_2(%arg0: i32) -> (i32, i32) {
    %c0_i32 = arith.constant 0 : i32
    %c0_i32_0 = arith.constant 0 : i32
    return %arg0, %c0_i32 : i32, i32
  }
}

</mosaic_0001>

<bundles_post_ra>
// kernel: forward.1
= control target key start
LH: loop header
LB: loop body
LE: loop exit
PB: predicated region body
PF: predicated region fallthrough
CT: control target
= control target key end

     0   :  { %s3253_s21 = smov 32   ;;  %s3254_s24 = smov 16   ;;  %vm636_vm0 = vcmask 261120   ;;  %vm326_vm1 = vcmask 130048   ;;  %vm799_vm2 = vcmask 588800   ;;  %vm2185_vm3 = vcmask 523264   ;;  %s6288_s1 = inlined_call_operand.vmem [shape: f32[24,3360], index: 1, kind: input, shape index: {}]   ;;  %s6289_s0 = inlined_call_operand.vmem [shape: f32[96,72], index: 0, kind: input, shape index: {}]   ;;  %s6290_s2 = inlined_call_operand.vmem [shape: f32[96,3136], index: 2, kind: output, shape index: {}]  }
   0x1   :  { %v3273_v0 = vld [vmem:[%s6288_s1 + $0x1b8] sm:$0xff]  ;;  %v3278_v1 = vld [vmem:[%s6288_s1 + $0x1c0] sm:$0xff]  ;;  %v3283_v2 = vld [vmem:[%s6288_s1 + $0x8] sm:$0xff] }
   0x2   :  { %v2795_v3 = vpack.i.bf16 %v3278_v1, %v3273_v0  ;;  %v3290_v4 = vld [vmem:[%s6288_s1 + $0x10] sm:$0xff]  ;;  %v3295_v5 = vld [vmem:[%s6288_s1 + $0xe0] sm:$0xff]  ;;  %v3302_v7 = vld [vmem:[%s6288_s1 + $0xd8] sm:$0xff] }
   0x3   :  { %v2805_v6 = vpack.i.bf16 %v3290_v4, %v3283_v2  ;;  %v2815_v8 = vpack.i.bf16 %v3295_v5, %v3302_v7  ;;  %v3311_v9 = vld [vmem:[%s6288_s1 + $0xe8] sm:$0xff]  ;;  %v3317_v10 = vld [vmem:[%s6288_s1 + $0x1b0] sm:$0xff]  ;;  %v3322_v11 = vld [vmem:[%s6288_s1] sm:$0xff] }
   0x4   :  { %2796 = vrot.lane.b32.xlu0 %v2795_v3, %s3253_s21  ;;  %v2800_v12 = vpack.i.bf16 %v3311_v9, %v3295_v5  ;;  %v2810_v13 = vpack.i.bf16 %v3273_v0, %v3317_v10  ;;  %v2820_v14 = vpack.i.bf16 %v3283_v2, %v3322_v11  ;;  %v3335_v15 = vld [vmem:[%s6288_s1 + $0x1c8] sm:$0xff]  ;;  %v3340_v16 = vld [vmem:[%s6288_s1 + $0x1d0] sm:$0xff]  ;;  %v3350_v18 = vld [vmem:[%s6288_s1 + $0x1d8] sm:$0xff] }
   0x5   :  { %2806 = vrot.lane.b32.xlu1 %v2805_v6, %s3253_s21  ;;  %2816 = vrot.lane.b32.xlu2 %v2815_v8, %s3254_s24  ;;  %v3345_v17 = vld [vmem:[%s6288_s1 + $0xf0] sm:$0xff]  ;;  %v3356_v19 = vld [vmem:[%s6288_s1 + $0xf8] sm:$0xff]  ;;  %v2825_v21 = vpack.i.bf16 %v3340_v16, %v3335_v15  ;;  %v2850_v30 = vpack.i.bf16 %v3335_v15, %v3278_v1  ;;  %v2855_v33 = vpack.i.bf16 %v3311_v9, %v3340_v16 }
   0x6   :  { %v3361_v20 = vld [vmem:[%s6288_s1 + $0x100] sm:$0xff]  ;;  %v2830_v22 = vpack.i.bf16 %v3345_v17, %v3350_v18  ;;  %v3374_v24 = vld [vmem:[%s6288_s1 + $0x18] sm:$0xff]  ;;  %v3384_v26 = vld [vmem:[%s6288_s1 + $0x28] sm:$0xff]  ;;  %v2860_v34 = vpack.i.bf16 %v3356_v19, %v3345_v17 }
   0x7   :  { %v2835_v23 = vpack.i.bf16 %v3361_v20, %v3356_v19  ;;  %v3379_v25 = vld [vmem:[%s6288_s1 + $0x20] sm:$0xff]  ;;  %v3404_v31 = vld [vmem:[%s6288_s1 + $0x30] sm:$0xff]  ;;  %v3409_v32 = vld [vmem:[%s6288_s1 + $0x108] sm:$0xff]  ;;  %v2870_v36 = vpack.i.bf16 %v3374_v24, %v3290_v4  ;;  %v2880_v38 = vpack.i.bf16 %v3384_v26, %v3361_v20 }
   0x8   :  { %v3389_v27 = vld [vmem:[%s6288_s1 + $0x1e0] sm:$0xff]  ;;  %v2840_v28 = vpack.i.bf16 %v3379_v25, %v3374_v24  ;;  %v2865_v35 = vpack.i.bf16 %v3404_v31, %v3409_v32  ;;  %v2875_v37 = vpack.i.bf16 %v3350_v18, %v3379_v25  ;;  %v3431_v39 = vld [vmem:[%s6288_s1 + $0x1e8] sm:$0xff]  ;;  %v3436_v40 = vld [vmem:[%s6288_s1 + $0x1f0] sm:$0xff] }
   0x9   :  { %v2845_v29 = vpack.i.bf16 %v3389_v27, %v3384_v26  ;;  %v3441_v41 = vld [vmem:[%s6288_s1 + $0x110] sm:$0xff]  ;;  %v3446_v42 = vld [vmem:[%s6288_s1 + $0x1f8] sm:$0xff]  ;;  %v3457_v44 = vld [vmem:[%s6288_s1 + $0x120] sm:$0xff]  ;;  %v2885_v45 = vpack.i.bf16 %v3436_v40, %v3431_v39  ;;  %v2910_v54 = vpack.i.bf16 %v3431_v39, %v3389_v27  ;;  %v2915_v56 = vpack.i.bf16 %v3409_v32, %v3436_v40 }
   0xa   :  { %v3452_v43 = vld [vmem:[%s6288_s1 + $0x118] sm:$0xff]  ;;  %v2890_v46 = vpack.i.bf16 %v3441_v41, %v3446_v42  ;;  %v3475_v49 = vld [vmem:[%s6288_s1 + $0x40] sm:$0xff]  ;;  %v3480_v50 = vld [vmem:[%s6288_s1 + $0x48] sm:$0xff] }
   0xb   :  { %v2895_v47 = vpack.i.bf16 %v3457_v44, %v3452_v43  ;;  %v3470_v48 = vld [vmem:[%s6288_s1 + $0x38] sm:$0xff]  ;;  %v75_v51 = vld [vmem:[%s6288_s1 + $0x200] sm:$0xff]  ;;  %v21_v55 = vld [vmem:[%s6288_s1 + $0x50] sm:$0xff]  ;;  %v2920_v57 = vpack.i.bf16 %v3452_v43, %v3441_v41  ;;  %v2935_v61 = vpack.i.bf16 %v3446_v42, %v3475_v49  ;;  %v2940_v62 = vpack.i.bf16 %v3480_v50, %v3457_v44 }
   0xc   :  { %2801 = vrot.lane.b32.xlu0 %v2800_v12, %s3253_s21  ;;  %v2900_v52 = vpack.i.bf16 %v3475_v49, %v3470_v48  ;;  %v2905_v53 = vpack.i.bf16 %v75_v51, %v3480_v50  ;;  %v48_v58 = vld [vmem:[%s6288_s1 + $0x128] sm:$0xff]  ;;  %v2930_v60 = vpack.i.bf16 %v3470_v48, %v3404_v31  ;;  %v77_v3 = vld [vmem:[%s6288_s1 + $0x210] sm:$0xff]  ;;  %v78_v8 = vld [vmem:[%s6288_s1 + $0x218] sm:$0xff] }
   0xd   :  { %2811 = vrot.lane.b32.xlu1 %v2810_v13, %s3254_s24  ;;  %2821 = vrot.lane.b32.xlu2 %v2820_v14, %s3254_s24  ;;  %v2925_v59 = vpack.i.bf16 %v21_v55, %v48_v58  ;;  %v76_v63 = vld [vmem:[%s6288_s1 + $0x208] sm:$0xff]  ;;  %v49_v6 = vld [vmem:[%s6288_s1 + $0x130] sm:$0xff] }
   0xe   :  { %v50_v12 = vld [vmem:[%s6288_s1 + $0x138] sm:$0xff]  ;;  %v3534_v13 = vld [vmem:[%s6288_s1 + $0x140] sm:$0xff]  ;;  %v2945_v14 = vpack.i.bf16 %v77_v3, %v76_v63 }
  0x14   :  { %2826 = vrot.lane.b32.xlu0 %v2825_v21, %s3253_s21  ;;  %v2950_v21 = vpack.i.bf16 %v49_v6, %v78_v8 }
  0x15   :  { %2831 = vrot.lane.b32.xlu1 %v2830_v22, %s3253_s21  ;;  %2836 = vrot.lane.b32.xlu2 %v2835_v23, %s3253_s21  ;;  %v2955_v22 = vpack.i.bf16 %v3534_v13, %v50_v12  ;;  %v22_v23 = vld [vmem:[%s6288_s1 + $0x58] sm:$0xff] }
  0x1c   :  { %2841 = vrot.lane.b32.xlu0 %v2840_v28, %s3253_s21  ;;  %v23_v28 = vld [vmem:[%s6288_s1 + $0x60] sm:$0xff] }
  0x1d   :  { %2846 = vrot.lane.b32.xlu1 %v2845_v29, %s3253_s21  ;;  %2851 = vrot.lane.b32.xlu2 %v2850_v30, %s3254_s24  ;;  %v2960_v29 = vpack.i.bf16 %v23_v28, %v22_v23  ;;  %v2970_v30 = vpack.i.bf16 %v76_v63, %v75_v51  ;;  %v2980_v51 = vpack.i.bf16 %v50_v12, %v49_v6 }
  0x1e   :  { %v2995_v12 = vpack.i.bf16 %v78_v8, %v23_v28 }
  0x24   :  { %2856 = vrot.lane.b32.xlu0 %v2855_v33, %s3254_s24  ;;  %v2975_v33 = vpack.i.bf16 %v48_v58, %v77_v3 }
  0x25   :  { %2861 = vrot.lane.b32.xlu1 %v2860_v34, %s3254_s24  ;;  %2866 = vrot.lane.b32.xlu2 %v2865_v35, %s3253_s21  ;;  %v2990_v35 = vpack.i.bf16 %v22_v23, %v21_v55 }
  0x2c   :  { %2871 = vrot.lane.b32.xlu0 %v2870_v36, %s3254_s24 }
  0x2d   :  { %2876 = vrot.lane.b32.xlu1 %v2875_v37, %s3254_s24  ;;  %2881 = vrot.lane.b32.xlu2 %v2880_v38, %s3254_s24  ;;  %v3557_v37 = vld [vmem:[%s6288_s1 + $0x68] sm:$0xff]  ;;  %v3562_v38 = vld [vmem:[%s6288_s1 + $0x220] sm:$0xff] }
  0x34   :  { %2886 = vrot.lane.b32.xlu0 %v2885_v45, %s3253_s21  ;;  %v2965_v45 = vpack.i.bf16 %v3562_v38, %v3557_v37 }
  0x35   :  { %2891 = vrot.lane.b32.xlu1 %v2890_v46, %s3253_s21  ;;  %2896 = vrot.lane.b32.xlu2 %v2895_v47, %s3253_s21 }
  0x3c   :  { %2901 = vrot.lane.b32.xlu0 %v2900_v52, %s3253_s21 }
  0x3d   :  { %2906 = vrot.lane.b32.xlu1 %v2905_v53, %s3253_s21  ;;  %2911 = vrot.lane.b32.xlu2 %v2910_v54, %s3254_s24 }
  0x44   :  { %2916 = vrot.lane.b32.xlu0 %v2915_v56, %s3254_s24  ;;  %v3582_v56 = vld [vmem:[%s6288_s1 + $0x228] sm:$0xff] }
  0x45   :  { %2921 = vrot.lane.b32.xlu1 %v2920_v57, %s3254_s24  ;;  %2926 = vrot.lane.b32.xlu2 %v2925_v59, %s3253_s21  ;;  %v3587_v57 = vld [vmem:[%s6288_s1 + $0x230] sm:$0xff] }
  0x46   :  { %v3005_v59 = vpack.i.bf16 %v3587_v57, %v3582_v56 }
  0x4c   :  { %2931 = vrot.lane.b32.xlu0 %v2930_v60, %s3254_s24 }
  0x4d   :  { %2936 = vrot.lane.b32.xlu1 %v2935_v61, %s3254_s24  ;;  %2941 = vrot.lane.b32.xlu2 %v2940_v62, %s3254_s24 }
  0x54   :  { %2946 = vrot.lane.b32.xlu0 %v2945_v14, %s3253_s21 }
  0x55   :  { %2951 = vrot.lane.b32.xlu1 %v2950_v21, %s3253_s21  ;;  %2956 = vrot.lane.b32.xlu2 %v2955_v22, %s3253_s21 }
  0x5c   :  { %2961 = vrot.lane.b32.xlu0 %v2960_v29, %s3253_s21 }
  0x5d   :  { %2971 = vrot.lane.b32.xlu2 %v2970_v30, %s3254_s24  ;;  %2966 = vrot.lane.b32.xlu1 %v2965_v45, %s3253_s21 }
  0x5f   :  { %v3548_v34 = vpop.permute.xlu2 %2816 }
  0x60   :  { %v2819_v23 = vunpack.i.h.bf16 %v3548_v34  ;;  %v2818_v29 = vunpack.i.l.bf16 %v3548_v34 }
  0x64   :  { %2976 = vrot.lane.b32.xlu0 %v2975_v33, %s3254_s24 }
  0x65   :  { %2981 = vrot.lane.b32.xlu1 %v2980_v51, %s3254_s24 }
  0x67   :  { %v3551_v36 = vpop.permute.xlu2 %2821 }
  0x68   :  { %v6291_v28 = vunpack.i.h.bf16 %v3551_v36  ;;  %v2823_v30 = vunpack.i.l.bf16 %v3551_v36 }
  0x6c   :  { %2991 = vrot.lane.b32.xlu0 %v2990_v35, %s3254_s24 }
  0x6d   :  { %2996 = vrot.lane.b32.xlu1 %v2995_v12, %s3254_s24 }
  0x6f   :  { %v3567_v46 = vpop.permute.xlu2 %2836 }
  0x74   :  { %3006 = vrot.lane.b32.xlu0 %v3005_v59, %s3253_s21 }
  0x76   :  { %v3569_v47 = vpop.permute.xlu0 %2796 }
  0x77   :  { %v2799_v52 = vunpack.i.h.bf16 %v3569_v47  ;;  %v2798_v53 = vunpack.i.l.bf16 %v3569_v47  ;;  %v3573_v54 = vpop.permute.xlu1 %2806  ;;  %v3589_v58 = vpop.permute.xlu2 %2851 }
  0x78   :  { %v2809_v60 = vunpack.i.h.bf16 %v3573_v54  ;;  %v2808_v62 = vunpack.i.l.bf16 %v3573_v54 }
  0x79   :  { %v687_v55 = vsel %vm636_vm0, %v2798_v53, %v2799_v52  ;;  %v352_v53 = vsel %vm326_vm1, %v2818_v29, %v2819_v23 }
  0x7a   :  { %843 = vmatpush.msra.mxu0 %v687_v55  ;;  %2766 = vmatpush.msra.mxu1 %v687_v55  ;;  %v637_v8 = vsel %vm636_vm0, %v2808_v62, %v2809_v60 }
  0x7b   :  { %2767 = vmatpush.msra.mxu2 %v687_v55  ;;  %2768 = vmatpush.msra.mxu3 %v687_v55  ;;  %v327_v55 = vsel %vm326_vm1, %v2823_v30, %v6291_v28 }
  0x7e   :  { %v3594_v61 = vpop.permute.xlu0 %2801 }
  0x7f   :  { %v2804_v63 = vunpack.i.h.bf16 %v3594_v61  ;;  %v2803_v3 = vunpack.i.l.bf16 %v3594_v61  ;;  %v3599_v6 = vpop.permute.xlu1 %2811  ;;  %v3618_v51 = vpop.permute.xlu2 %2866 }
  0x80   :  { %v2814_v14 = vunpack.i.h.bf16 %v3599_v6  ;;  %v2813_v21 = vunpack.i.l.bf16 %v3599_v6  ;;  %v6292_v47 = vunpack.i.h.bf16 %v3618_v51  ;;  %v3741_v6 = vld [vmem:[%s6288_s1 + $0x148] sm:$0xff] }
  0x81   :  { %v662_v22 = vsel %vm636_vm0, %v2803_v3, %v2804_v63 }
  0x82   :  { %844 = vmatpush.msra.mxu0 %v662_v22  ;;  %2769 = vmatpush.msra.mxu1 %v662_v22  ;;  %v377_v33 = vsel %vm326_vm1, %v2813_v21, %v2814_v14  ;;  %v2838_v21 = vunpack.i.l.bf16 %v3567_v46 }
  0x83   :  { %2770 = vmatpush.msra.mxu2 %v662_v22  ;;  %2771 = vmatpush.msra.mxu3 %v662_v22 }
  0x84   :  { %845 = vmatpush.msra.mxu0 %v637_v8  ;;  %2772 = vmatpush.msra.mxu1 %v637_v8 }
  0x85   :  { %2773 = vmatpush.msra.mxu2 %v637_v8  ;;  %2774 = vmatpush.msra.mxu3 %v637_v8  ;;  %v2839_v8 = vunpack.i.h.bf16 %v3567_v46 }
  0x86   :  { %v2827_v35 = vpop.permute.xlu0 %2826  ;;  %846 = vmatpush.msra.mxu0 %v377_v33  ;;  %2775 = vmatpush.msra.mxu1 %v377_v33 }
  0x87   :  { %v2832_v45 = vpop.permute.xlu1 %2831  ;;  %2776 = vmatpush.msra.mxu2 %v377_v33  ;;  %2777 = vmatpush.msra.mxu3 %v377_v33  ;;  %v2829_v59 = vunpack.i.h.bf16 %v2827_v35  ;;  %v2828_v62 = vunpack.i.l.bf16 %v2827_v35  ;;  %v6293_v33 = vunpack.i.l.bf16 %v3618_v51  ;;  %v3643_v35 = vpop.permute.xlu2 %2881 }
  0x88   :  { %847 = vmatpush.msra.mxu0 %v352_v53  ;;  %2778 = vmatpush.msra.mxu1 %v352_v53  ;;  %v2833_v3 = vunpack.i.l.bf16 %v2832_v45  ;;  %v2834_v22 = vunpack.i.h.bf16 %v2832_v45 }
  0x89   :  { %2779 = vmatpush.msra.mxu2 %v352_v53  ;;  %2780 = vmatpush.msra.mxu3 %v352_v53  ;;  %v689_v46 = vsel %vm636_vm0, %v2828_v62, %v2829_v59  ;;  %v666_v61 = vsel %vm636_vm0, %v2839_v8, %v6293_v33 }
  0x8a   :  { %848 = vmatpush.msra.mxu0 %v327_v55  ;;  %2781 = vmatpush.msra.mxu1 %v327_v55 }
  0x8b   :  { %2782 = vmatpush.msra.mxu2 %v327_v55  ;;  %2783 = vmatpush.msra.mxu3 %v327_v55  ;;  %v690_v55 = vsel %vm636_vm0, %v2829_v59, %v2833_v3  ;;  %v664_v59 = vsel %vm636_vm0, %v2834_v22, %v2838_v21 }
  0x8c   :  { %2784 = vmatpush.msra.mxu1 %v3317_v10  ;;  %849 = vmatpush.msra.mxu0 %v3317_v10 }
  0x8d   :  { %2785 = vmatpush.msra.mxu2 %v3317_v10  ;;  %2786 = vmatpush.msra.mxu3 %v3317_v10  ;;  %v2854_v10 = vunpack.i.h.bf16 %v3589_v58 }
  0x8e   :  { %v2842_v12 = vpop.permute.xlu0 %2841  ;;  %2787 = vmatpush.msra.mxu1 %v3302_v7  ;;  %850 = vmatpush.msra.mxu0 %v3302_v7 }
  0x8f   :  { %v3633_v29 = vpop.permute.xlu1 %2846  ;;  %2788 = vmatpush.msra.mxu2 %v3302_v7  ;;  %2789 = vmatpush.msra.mxu3 %v3302_v7  ;;  %v688_v7 = vsel %vm636_vm0, %v2799_v52, %v2828_v62  ;;  %v2844_v45 = vunpack.i.h.bf16 %v2842_v12  ;;  %v2843_v53 = vunpack.i.l.bf16 %v2842_v12  ;;  %v663_v62 = vsel %vm636_vm0, %v2804_v63, %v2834_v22  ;;  %v3681_v63 = vld [vmem:[%s6288_s1 + $0x150] sm:$0xff] }
  0x90   :  { %v6294_v30 = vunpack.i.h.bf16 %v3633_v29  ;;  %2790 = vmatpush.msra.mxu1 %v3322_v11  ;;  %851 = vmatpush.msra.mxu0 %v3322_v11  ;;  %v2848_v52 = vunpack.i.l.bf16 %v3633_v29  ;;  %v2853_v12 = vunpack.i.l.bf16 %v3589_v58  ;;  %v3686_v58 = vld [vmem:[%s6288_s1 + $0x238] sm:$0xff] }
  0x91   :  { %2791 = vmatpush.msra.mxu2 %v3322_v11  ;;  %2792 = vmatpush.msra.mxu3 %v3322_v11  ;;  %v3658_v11 = vld [vmem:[%s6289_s0 + $0x30] sm:$0xff] }
  0x92   :  { %896 = vmatpush.msrb.mxu1 %v688_v7  ;;  %v691_v28 = vsel %vm636_vm0, %v2833_v3, %v6294_v30  ;;  %v3669_v3 = vld [vmem:[%s6289_s0 + $0x48] sm:$0xff]  ;;  %v665_v7 = vsel %vm636_vm0, %v2838_v21, %v2839_v8  ;;  %2472 = vmatmul.msk.f32.vlgmr.msra.gmra.mxu2 %vm799_vm2, %v3658_v11  ;;  %v639_v21 = vsel %vm636_vm0, %v2843_v53, %v2844_v45 }
  0x93   :  { %949 = vmatpush.msrb.mxu2 %v689_v46  ;;  %1002 = vmatpush.msrb.mxu3 %v690_v55  ;;  %v379_v8 = vsel %vm326_vm1, %v2853_v12, %v2854_v10  ;;  %v3698_v46 = vld [vmem:[%s6288_s1 + $0x78] sm:$0xff]  ;;  %v3703_v55 = vld [vmem:[%s6288_s1 + $0x80] sm:$0xff]  ;;  %v640_v54 = vsel %vm636_vm0, %v2844_v45, %v2848_v52  ;;  %v3724_v45 = vld [vmem:[%s6288_s1 + $0x70] sm:$0xff] }
  0x94   :  { %1055 = vmatpush.msrb.mxu0 %v691_v28  ;;  %897 = vmatpush.msrb.mxu1 %v663_v62  ;;  %v638_v28 = vsel %vm636_vm0, %v2809_v60, %v2843_v53 }
  0x95   :  { %950 = vmatpush.msrb.mxu2 %v664_v59  ;;  %1003 = vmatpush.msrb.mxu3 %v665_v7  ;;  %v641_v59 = vsel %vm636_vm0, %v2848_v52, %v6292_v47  ;;  %v3714_v7 = vld [vmem:[%s6289_s0] sm:$0xff]  ;;  %v378_v52 = vsel %vm326_vm1, %v2814_v14, %v2853_v12  ;;  %v3756_v12 = vpop.permute.xlu2 %2896 }
  0x96   :  { %2475 = vmatmul.msk.f32.vlgmr.msra.gmra.mxu3 %vm799_vm2, %v3669_v3  ;;  %1056 = vmatpush.msrb.mxu0 %v666_v61  ;;  %v2857_v22 = vpop.permute.xlu0 %2856  ;;  %v3719_v61 = vld [vmem:[%s6289_s0 + $0x18] sm:$0xff] }
  0x97   :  { %898 = vmatpush.msrb.mxu1 %v638_v28  ;;  %951 = vmatpush.msrb.mxu2 %v639_v21  ;;  %v2859_v60 = vunpack.i.h.bf16 %v2857_v22  ;;  %v2858_v62 = vunpack.i.l.bf16 %v2857_v22  ;;  %v3706_v53 = vpop.permute.xlu1 %2861  ;;  %v3010_v21 = vpack.i.bf16 %v3681_v63, %v3686_v58 }
  0x98   :  { %1004 = vmatpush.msrb.mxu3 %v640_v54  ;;  %v2863_v28 = vunpack.i.l.bf16 %v3706_v53  ;;  %1057 = vmatpush.msrb.mxu0 %v641_v59  ;;  %v3020_v54 = vpack.i.bf16 %v3703_v55, %v3698_v46  ;;  %v2864_v14 = vunpack.i.h.bf16 %v3706_v53 }
  0x99   :  { %899 = vmatpush.msrb.mxu1 %v378_v52  ;;  %952 = vmatpush.msrb.mxu2 %v379_v8  ;;  %v353_v22 = vsel %vm326_vm1, %v2819_v23, %v2859_v60  ;;  %v380_v47 = vsel %vm326_vm1, %v2854_v10, %v2858_v62  ;;  %v3752_v23 = vld [vmem:[%s6289_s0 + $0x38] sm:$0xff]  ;;  %v2985_v10 = vpack.i.bf16 %v3724_v45, %v3741_v6  ;;  %v3761_v8 = vld [vmem:[%s6289_s0 + $0x50] sm:$0xff] }
  0x9a   :  { %2466 = vmatmul.msk.f32.vlgmr.msra.gmra.mxu0 %vm799_vm2, %v3714_v7  ;;  %2469 = vmatmul.msk.f32.vlgmr.msra.gmra.mxu1 %vm799_vm2, %v3719_v61  ;;  %v354_v34 = vsel %vm326_vm1, %v2859_v60, %v2863_v28  ;;  %v355_v60 = vsel %vm326_vm1, %v2863_v28, %v2864_v14 }
  0x9b   :  { %900 = vmatpush.msrb.mxu1 %v353_v22  ;;  %953 = vmatpush.msrb.mxu2 %v354_v34  ;;  %v6296_v34 = vunpack.i.h.bf16 %v3551_v36  ;;  %v3801_v36 = vld [vmem:[%s6289_s0 + $0x40] sm:$0xff] }
  0x9c   :  { %1005 = vmatpush.msrb.mxu3 %v380_v47  ;;  %3011 = vrot.lane.b32.xlu1 %v3010_v21, %s3253_s21  ;;  %v3776_v47 = vld [vmem:[%s6289_s0 + $0x8] sm:$0xff]  ;;  %v3781_v21 = vld [vmem:[%s6289_s0 + $0x20] sm:$0xff] }
  0x9d   :  { %2473 = vmatmul.msk.f32.gmra.mxu2 %vm799_vm2, %v3752_v23  ;;  %3021 = vrot.lane.b32.xlu0 %v3020_v54, %s3253_s21 }
  0x9e   :  { %2476 = vmatmul.msk.f32.gmra.mxu3 %vm799_vm2, %v3761_v8  ;;  %v2872_v53 = vpop.permute.xlu0 %2871  ;;  %2986 = vrot.lane.b32.xlu2 %v2985_v10, %s3253_s21 }
  0x9f   :  { %1006 = vmatpush.msrb.mxu3 %v355_v60  ;;  %v2874_v59 = vunpack.i.h.bf16 %v2872_v53  ;;  %v2873_v52 = vunpack.i.l.bf16 %v2872_v53  ;;  %v3771_v22 = vpop.permute.xlu1 %2876  ;;  %v2883_v53 = vunpack.i.l.bf16 %v3643_v35 }
  0xa0   :  { %v6295_v28 = vunpack.i.h.bf16 %v3771_v22  ;;  %v2878_v54 = vunpack.i.l.bf16 %v3771_v22 }
  0xa1   :  { %v328_v10 = vsel %vm326_vm1, %v6296_v34, %v2873_v52  ;;  %v329_v60 = vsel %vm326_vm1, %v2873_v52, %v2874_v59  ;;  %v3806_v52 = vld [vmem:[%s6289_s0 + $0x58] sm:$0xff]  ;;  %v2884_v34 = vunpack.i.h.bf16 %v3643_v35  ;;  %v3030_v35 = vpack.i.bf16 %v3582_v56, %v3562_v38 }
  0xa2   :  { %2467 = vmatmul.msk.f32.gmra.mxu0 %vm799_vm2, %v3776_v47  ;;  %2470 = vmatmul.msk.f32.gmra.mxu1 %vm799_vm2, %v3781_v21  ;;  %v330_v33 = vsel %vm326_vm1, %v2874_v59, %v2878_v54  ;;  %v381_v30 = vsel %vm326_vm1, %v2858_v62, %v6295_v28  ;;  %v3809_v59 = vpop.permute.xlu2 %2911  ;;  %v356_v62 = vsel %vm326_vm1, %v2864_v14, %v2883_v53  ;;  %v3836_v14 = vld [vmem:[%s6289_s0 + $0x28] sm:$0xff] }
  0xa3   :  { %901 = vmatpush.msrb.mxu1 %v328_v10  ;;  %954 = vmatpush.msrb.mxu2 %v329_v60 }
  0xa4   :  { %1007 = vmatpush.msrb.mxu3 %v330_v33  ;;  %1058 = vmatpush.msrb.mxu0 %v381_v30 }
  0xa5   :  { %2474 = vmatmul.msk.f32.gmra.mxu2 %vm799_vm2, %v3801_v36  ;;  %902 = vmatpush.msrb.mxu1 %v3273_v0  ;;  %v331_v0 = vsel %vm326_vm1, %v2878_v54, %v2884_v34  ;;  %v2899_v54 = vunpack.i.h.bf16 %v3756_v12 }
  0xa6   :  { %2477 = vmatmul.msk.f32.gmra.mxu3 %vm799_vm2, %v3806_v52  ;;  %955 = vmatpush.msrb.mxu2 %v3278_v1  ;;  %v2887_v10 = vpop.permute.xlu0 %2886  ;;  %v3829_v1 = vld [vmem:[%s6289_s0 + $0x10] sm:$0xff] }
  0xa7   :  { %1008 = vmatpush.msrb.mxu3 %v3335_v15  ;;  %1059 = vmatpush.msrb.mxu0 %v356_v62  ;;  %v2889_v30 = vunpack.i.h.bf16 %v2887_v10  ;;  %v2888_v33 = vunpack.i.l.bf16 %v2887_v10  ;;  %v2892_v60 = vpop.permute.xlu1 %2891  ;;  %v2898_v15 = vunpack.i.l.bf16 %v3756_v12 }
  0xa8   :  { %v2893_v28 = vunpack.i.l.bf16 %v2892_v60  ;;  %903 = vmatpush.msrb.mxu1 %v3295_v5  ;;  %956 = vmatpush.msrb.mxu2 %v3311_v9  ;;  %v2894_v5 = vunpack.i.h.bf16 %v2892_v60  ;;  %v6297_v9 = vunpack.i.h.bf16 %v3633_v29  ;;  %v3035_v29 = vpack.i.bf16 %v3741_v6, %v3587_v57 }
  0xa9   :  { %1060 = vmatpush.msrb.mxu0 %v331_v0  ;;  %1009 = vmatpush.msrb.mxu3 %v3345_v17  ;;  %v693_v10 = vsel %vm636_vm0, %v2888_v33, %v2889_v30  ;;  %v2914_v6 = vunpack.i.h.bf16 %v3809_v59 }
  0xaa   :  { %904 = vmatpush.msrb.mxu1 %v3283_v2  ;;  %957 = vmatpush.msrb.mxu2 %v3290_v4  ;;  %v692_v62 = vsel %vm636_vm0, %v6297_v9, %v2888_v33  ;;  %v694_v17 = vsel %vm636_vm0, %v2889_v30, %v2893_v28  ;;  %v3852_v2 = vpop.permute.xlu2 %2926  ;;  %v668_v4 = vsel %vm636_vm0, %v2894_v5, %v2898_v15  ;;  %v2913_v9 = vunpack.i.l.bf16 %v3809_v59 }
  0xab   :  { %1010 = vmatpush.msrb.mxu3 %v3374_v24  ;;  %2468 = vmatmul.msk.f32.gmra.mxu0 %vm799_vm2, %v3829_v1  ;;  %v6298_v24 = vunpack.i.l.bf16 %v3618_v51  ;;  %v669_v30 = vsel %vm636_vm0, %v2898_v15, %v2899_v54  ;;  %v2928_v33 = vunpack.i.l.bf16 %v3852_v2 }
  0xac   :  { %2471 = vmatmul.msk.f32.gmra.mxu1 %vm799_vm2, %v3836_v14  ;;  %1061 = vmatpush.msrb.mxu0 %v3340_v16 }
  0xad   :  { %1108 = vmatpush.msra.mxu1 %v692_v62  ;;  %1161 = vmatpush.msra.mxu2 %v693_v10  ;;  %v667_v12 = vsel %vm636_vm0, %v6298_v24, %v2894_v5  ;;  %v2929_v62 = vunpack.i.h.bf16 %v3852_v2  ;;  %v6299_v10 = vunpack.i.h.bf16 %v3618_v51  ;;  %v670_v51 = vsel %vm636_vm0, %v2899_v54, %v2928_v33 }
  0xae   :  { %1214 = vmatpush.msra.mxu3 %v694_v17  ;;  %2490 = vmatmul.msk.f32.vlgmr.msrb.gmra.mxu2 %vm799_vm2, %v3714_v7  ;;  %v2902_v16 = vpop.permute.xlu0 %2901  ;;  %v3000_v24 = vpack.i.bf16 %v3557_v37, %v3534_v13  ;;  %v3050_v54 = vpack.i.bf16 %v3698_v46, %v3724_v45 }
  0xaf   :  { %2502 = vmatmul.msk.f32.vlgmr.msrb.gmra.mxu3 %vm799_vm2, %v3714_v7  ;;  %1109 = vmatpush.msra.mxu1 %v667_v12  ;;  %v2904_v60 = vunpack.i.h.bf16 %v2902_v16  ;;  %v2903_v0 = vunpack.i.l.bf16 %v2902_v16  ;;  %v3866_v57 = vpop.permute.xlu1 %2906 }
  0xb0   :  { %1162 = vmatpush.msra.mxu2 %v668_v4  ;;  %1062 = vmatpush.msrb.mxu0 %v3356_v19  ;;  %v2909_v15 = vunpack.i.h.bf16 %v3866_v57  ;;  %v2908_v5 = vunpack.i.l.bf16 %v3866_v57 }
  0xb1   :  { %1215 = vmatpush.msra.mxu3 %v669_v30  ;;  %v642_v17 = vsel %vm636_vm0, %v6299_v10, %v2903_v0  ;;  %3036 = vrot.lane.b32.xlu0 %v3035_v29, %s3254_s24  ;;  %v643_v4 = vsel %vm636_vm0, %v2903_v0, %v2904_v60 }
  0xb2   :  { %1063 = vmatpush.msrb.mxu0 %v3379_v25  ;;  %1110 = vmatpush.msra.mxu1 %v642_v17  ;;  %v644_v59 = vsel %vm636_vm0, %v2904_v60, %v2908_v5  ;;  %v695_v19 = vsel %vm636_vm0, %v2893_v28, %v2909_v15  ;;  %v6300_v25 = vunpack.i.h.bf16 %v3771_v22  ;;  %v383_v28 = vsel %vm326_vm1, %v2913_v9, %v2914_v6  ;;  %v3906_v16 = vpop.permute.xlu2 %2941 }
  0xb3   :  { %2514 = vmatmul.msk.f32.vlgmr.msrb.gmra.mxu0 %vm799_vm2, %v3714_v7  ;;  %1216 = vmatpush.msra.mxu3 %v644_v59  ;;  %v645_v12 = vsel %vm636_vm0, %v2908_v5, %v2929_v62  ;;  %v3922_v5 = vld [vmem:[%s6288_s1 + $0x160] sm:$0xff] }
  0xb4   :  { %2478 = vmatmul.msk.f32.vlgmr.msrb.gmra.mxu1 %vm799_vm2, %v3714_v7  ;;  %1267 = vmatpush.msra.mxu0 %v695_v19  ;;  %v382_v29 = vsel %vm326_vm1, %v6300_v25, %v2913_v9  ;;  %v3917_v9 = vld [vmem:[%s6288_s1 + $0x158] sm:$0xff] }
  0xb5   :  { %1163 = vmatpush.msra.mxu2 %v643_v4  ;;  %1111 = vmatpush.msra.mxu1 %v382_v29 }
  0xb6   :  { %2491 = vmatmul.msk.f32.gmra.mxu2 %vm799_vm2, %v3776_v47  ;;  %1268 = vmatpush.msra.mxu0 %v670_v51  ;;  %v2917_v22 = vpop.permute.xlu0 %2916  ;;  %v2943_v51 = vunpack.i.l.bf16 %v3906_v16 }
  0xb7   :  { %2503 = vmatmul.msk.f32.gmra.mxu3 %vm799_vm2, %v3776_v47  ;;  %1164 = vmatpush.msra.mxu2 %v383_v28  ;;  %v2919_v30 = vunpack.i.h.bf16 %v2917_v22  ;;  %v2918_v13 = vunpack.i.l.bf16 %v2917_v22  ;;  %v2922_v37 = vpop.permute.xlu1 %2921  ;;  %v2944_v28 = vunpack.i.h.bf16 %v3906_v16  ;;  %v4098_v16 = vld [vmem:[%s6288_s1 + $0x258] sm:$0xff] }
  0xb8   :  { %v2924_v60 = vunpack.i.h.bf16 %v2922_v37  ;;  %v2923_v0 = vunpack.i.l.bf16 %v2922_v37  ;;  %1269 = vmatpush.msra.mxu0 %v645_v12  ;;  %3001 = vrot.lane.b32.xlu2 %v3000_v24, %s3254_s24 }
  0xb9   :  { %v357_v46 = vsel %vm326_vm1, %v2883_v53, %v2919_v30  ;;  %v384_v45 = vsel %vm326_vm1, %v2914_v6, %v2918_v13  ;;  %3051 = vrot.lane.b32.xlu0 %v3050_v54, %s3254_s24  ;;  %v3015_v6 = vpack.i.bf16 %v3922_v5, %v3917_v9 }
  0xba   :  { %1112 = vmatpush.msra.mxu1 %v357_v46  ;;  %1217 = vmatpush.msra.mxu3 %v384_v45  ;;  %v358_v10 = vsel %vm326_vm1, %v2919_v30, %v2923_v0  ;;  %v359_v53 = vsel %vm326_vm1, %v2923_v0, %v2924_v60  ;;  %v3942_v12 = vpop.permute.xlu2 %2956  ;;  %v360_v30 = vsel %vm326_vm1, %v2924_v60, %v2943_v51 }
  0xbb   :  { %2515 = vmatmul.msk.f32.gmra.mxu0 %vm799_vm2, %v3776_v47  ;;  %1165 = vmatpush.msra.mxu2 %v358_v10  ;;  %v3055_v45 = vpack.i.bf16 %v3686_v58, %v3703_v55  ;;  %v4093_v55 = vld [vmem:[%s6288_s1 + $0x170] sm:$0xff] }
  0xbc   :  { %2479 = vmatmul.msk.f32.gmra.mxu1 %vm799_vm2, %v3776_v47  ;;  %1218 = vmatpush.msra.mxu3 %v359_v53 }
  0xbe   :  { %2492 = vmatmul.msk.f32.gmra.mxu2 %vm799_vm2, %v3829_v1  ;;  %v2932_v17 = vpop.permute.xlu0 %2931 }
  0xbf   :  { %2504 = vmatmul.msk.f32.gmra.mxu3 %vm799_vm2, %v3829_v1  ;;  %v2934_v59 = vunpack.i.h.bf16 %v2932_v17  ;;  %v2933_v19 = vunpack.i.l.bf16 %v2932_v17  ;;  %v2937_v4 = vpop.permute.xlu1 %2936  ;;  %v2958_v17 = vunpack.i.l.bf16 %v3942_v12 }
  0xc0   :  { %v2939_v25 = vunpack.i.h.bf16 %v2937_v4  ;;  %v2938_v29 = vunpack.i.l.bf16 %v2937_v4  ;;  %3016 = vrot.lane.b32.xlu2 %v3015_v6, %s3253_s21  ;;  %v4117_v4 = vld [vmem:[%s6288_s1 + $0xa0] sm:$0xff] }
  0xc1   :  { %v332_v24 = vsel %vm326_vm1, %v2884_v34, %v2933_v19  ;;  %v333_v34 = vsel %vm326_vm1, %v2933_v19, %v2934_v59  ;;  %v3070_v19 = vpack.i.bf16 %v4093_v55, %v4098_v16 }
  0xc2   :  { %1113 = vmatpush.msra.mxu1 %v332_v24  ;;  %v385_v54 = vsel %vm326_vm1, %v2918_v13, %v2939_v25  ;;  %v334_v22 = vsel %vm326_vm1, %v2934_v59, %v2938_v29  ;;  %v335_v13 = vsel %vm326_vm1, %v2938_v29, %v2944_v28  ;;  %1166 = vmatpush.msra.mxu2 %v333_v34  ;;  %v29_v24 = vld [vmem:[%s6288_s1 + $0x90] sm:$0xff] }
  0xc3   :  { %2516 = vmatmul.msk.f32.gmra.mxu0 %vm799_vm2, %v3829_v1  ;;  %1219 = vmatpush.msra.mxu3 %v334_v22 }
  0xc4   :  { %2480 = vmatmul.msk.f32.gmra.mxu1 %vm799_vm2, %v3829_v1  ;;  %1270 = vmatpush.msra.mxu0 %v385_v54 }
  0xc5   :  { %1114 = vmatpush.msra.mxu1 %v3350_v18  ;;  %1167 = vmatpush.msra.mxu2 %v3389_v27 }
  0xc6   :  { %2493 = vmatmul.msk.f32.gmra.mxu2 %vm799_vm2, %v3719_v61  ;;  %v3962_v37 = vpop.permute.xlu0 %2946  ;;  %1271 = vmatpush.msra.mxu0 %v360_v30 }
  0xc7   :  { %2505 = vmatmul.msk.f32.gmra.mxu3 %vm799_vm2, %v3719_v61  ;;  %v2948_v38 = vunpack.i.l.bf16 %v3962_v37  ;;  %v3967_v56 = vpop.permute.xlu1 %2951  ;;  %1115 = vmatpush.msra.mxu1 %v3361_v20  ;;  %v2949_v10 = vunpack.i.h.bf16 %v3962_v37 }
  0xc8   :  { %v2954_v18 = vunpack.i.h.bf16 %v3967_v56  ;;  %1272 = vmatpush.msra.mxu0 %v335_v13  ;;  %3031 = vrot.lane.b32.xlu2 %v3030_v35, %s3254_s24  ;;  %v2953_v6 = vunpack.i.l.bf16 %v3967_v56 }
  0xc9   :  { %1116 = vmatpush.msra.mxu1 %v3384_v26  ;;  %v696_v60 = vsel %vm636_vm0, %v2909_v15, %v2948_v38  ;;  %1220 = vmatpush.msra.mxu3 %v3431_v39  ;;  %v3987_v26 = vpop.permute.xlu2 %2971  ;;  %v4053_v15 = vld [vmem:[%s6288_s1 + $0x248] sm:$0xff]  ;;  %v697_v53 = vsel %vm636_vm0, %v2948_v38, %v2949_v10 }
  0xca   :  { %v671_v20 = vsel %vm636_vm0, %v2928_v33, %v2954_v18  ;;  %1168 = vmatpush.msra.mxu2 %v3409_v32  ;;  %1273 = vmatpush.msra.mxu0 %v3436_v40  ;;  %v2973_v39 = vunpack.i.l.bf16 %v3987_v26  ;;  %v4006_v40 = vld [vmem:[%s6288_s1 + $0x88] sm:$0xff]  ;;  %v698_v29 = vsel %vm636_vm0, %v2949_v10, %v2953_v6  ;;  %v2974_v35 = vunpack.i.h.bf16 %v3987_v26 }
  0xcb   :  { %1320 = vmatpush.msrb.mxu1 %v696_v60  ;;  %2517 = vmatmul.msk.f32.gmra.mxu0 %vm799_vm2, %v3719_v61 }
  0xcc   :  { %2481 = vmatmul.msk.f32.gmra.mxu1 %vm799_vm2, %v3719_v61  ;;  %1221 = vmatpush.msra.mxu3 %v3441_v41  ;;  %v4011_v41 = vld [vmem:[%s6288_s1 + $0x240] sm:$0xff]  ;;  %v386_v57 = vsel %vm326_vm1, %v2939_v25, %v2973_v39  ;;  %v672_v25 = vsel %vm636_vm0, %v2954_v18, %v2958_v17  ;;  %v387_v38 = vsel %vm326_vm1, %v2973_v39, %v2974_v35 }
  0xcd   :  { %1321 = vmatpush.msrb.mxu1 %v671_v20  ;;  %1274 = vmatpush.msra.mxu0 %v3452_v43  ;;  %v3025_v43 = vpack.i.bf16 %v4011_v41, %v4006_v40 }
  0xce   :  { %2494 = vmatmul.msk.f32.gmra.mxu2 %vm799_vm2, %v3781_v21  ;;  %v3996_v27 = vpop.permute.xlu0 %2961  ;;  %1222 = vmatpush.msra.mxu3 %v3470_v48 }
  0xcf   :  { %2506 = vmatmul.msk.f32.gmra.mxu3 %vm799_vm2, %v3781_v21  ;;  %v2963_v32 = vunpack.i.l.bf16 %v3996_v27  ;;  %1169 = vmatpush.msra.mxu2 %v3404_v31  ;;  %v4088_v58 = vpop.permute.xlu1 %2966  ;;  %v2964_v54 = vunpack.i.h.bf16 %v3996_v27 }
  0xd0   :  { %1275 = vmatpush.msra.mxu0 %v3475_v49  ;;  %3026 = vrot.lane.b32.xlu1 %v3025_v43, %s3253_s21  ;;  %v3040_v49 = vpack.i.bf16 %v3917_v9, %v3681_v63  ;;  %v4058_v63 = vld [vmem:[%s6288_s1 + $0x250] sm:$0xff]  ;;  %v2969_v59 = vunpack.i.h.bf16 %v4088_v58  ;;  %v2968_v22 = vunpack.i.l.bf16 %v4088_v58 }
  0xd1   :  { %v646_v33 = vsel %vm636_vm0, %v2929_v62, %v2963_v32  ;;  %v3065_v62 = vpack.i.bf16 %v4058_v63, %v4053_v15  ;;  %1373 = vmatpush.msrb.mxu2 %v697_v53  ;;  %1426 = vmatpush.msrb.mxu3 %v698_v29  ;;  %v647_v37 = vsel %vm636_vm0, %v2963_v32, %v2964_v54 }
  0xd2   :  { %1322 = vmatpush.msrb.mxu1 %v646_v33  ;;  %v648_v13 = vsel %vm636_vm0, %v2964_v54, %v2968_v22  ;;  %v3090_v29 = vpack.i.bf16 %v4053_v15, %v4011_v41  ;;  %v3185_v54 = vld [vmem:[%s6288_s1 + $0x208] sm:$0xff] }
  0xd3   :  { %2518 = vmatmul.msk.f32.gmra.mxu0 %vm799_vm2, %v3781_v21  ;;  %3066 = vrot.lane.b32.xlu0 %v3065_v62, %s3253_s21 }
  0xd4   :  { %2482 = vmatmul.msk.f32.gmra.mxu1 %vm799_vm2, %v3781_v21  ;;  %1374 = vmatpush.msrb.mxu2 %v672_v25 }
  0xd5   :  { %1323 = vmatpush.msrb.mxu1 %v386_v57 }
  0xd6   :  { %2495 = vmatmul.msk.f32.gmra.mxu2 %vm799_vm2, %v3836_v14  ;;  %v4033_v31 = vpop.permute.xlu0 %2976 }
  0xd7   :  { %2507 = vmatmul.msk.f32.gmra.mxu3 %vm799_vm2, %v3836_v14  ;;  %v2979_v48 = vunpack.i.h.bf16 %v4033_v31  ;;  %v2978_v34 = vunpack.i.l.bf16 %v4033_v31  ;;  %1375 = vmatpush.msrb.mxu2 %v647_v37  ;;  %v2982_v27 = vpop.permute.xlu1 %2981  ;;  %v3190_v37 = vld [vmem:[%s6288_s1 + $0x60] sm:$0xff] }
  0xd8   :  { %3041 = vrot.lane.b32.xlu1 %v3040_v49, %s3254_s24  ;;  %v2984_v49 = vunpack.i.h.bf16 %v2982_v27 }
  0xd9   :  { %v361_v2 = vsel %vm326_vm1, %v2943_v51, %v2979_v48  ;;  %v388_v56 = vsel %vm326_vm1, %v2974_v35, %v2978_v34  ;;  %1376 = vmatpush.msrb.mxu2 %v387_v38  ;;  %v3187_v35 = vld [vmem:[%s6288_s1 + $0x130] sm:$0xff] }
  0xda   :  { %1324 = vmatpush.msrb.mxu1 %v361_v2  ;;  %v2983_v2 = vunpack.i.l.bf16 %v2982_v27 }
  0xdb   :  { %2519 = vmatmul.msk.f32.gmra.mxu0 %vm799_vm2, %v3836_v14 }
  0xdc   :  { %2483 = vmatmul.msk.f32.gmra.mxu1 %vm799_vm2, %v3836_v14  ;;  %v363_v62 = vsel %vm326_vm1, %v2983_v2, %v2984_v49 }
  0xde   :  { %2496 = vmatmul.msk.f32.gmra.mxu2 %vm799_vm2, %v3658_v11  ;;  %v4064_v0 = vpop.permute.xlu0 %2991 }
  0xdf   :  { %2508 = vmatmul.msk.f32.gmra.mxu3 %vm799_vm2, %v3658_v11  ;;  %v2993_v46 = vunpack.i.l.bf16 %v4064_v0  ;;  %v4190_v43 = vpop.permute.xlu1 %2996  ;;  %v2994_v10 = vunpack.i.h.bf16 %v4064_v0  ;;  %v3191_v0 = vld [vmem:[%s6288_s1 + $0x200] sm:$0xff] }
  0xe0   :  { %3056 = vrot.lane.b32.xlu1 %v3055_v45, %s3254_s24  ;;  %v4218_v45 = vld [vmem:[%s6288_s1 + $0x178] sm:$0xff] }
  0xe1   :  { %v336_v9 = vsel %vm326_vm1, %v2944_v28, %v2993_v46 }
  0xe2   :  { %1325 = vmatpush.msrb.mxu1 %v336_v9  ;;  %v4223_v9 = vld [vmem:[%s6288_s1 + $0x180] sm:$0xff] }
  0xe3   :  { %2520 = vmatmul.msk.f32.gmra.mxu0 %vm799_vm2, %v3658_v11 }
  0xe4   :  { %2484 = vmatmul.msk.f32.gmra.mxu1 %vm799_vm2, %v3658_v11 }
  0xe5   :  { %1326 = vmatpush.msrb.mxu1 %v3446_v42  ;;  %v4103_v42 = vld [vmem:[%s6288_s1 + $0x98] sm:$0xff] }
  0xe6   :  { %2497 = vmatmul.msk.f32.gmra.mxu2 %vm799_vm2, %v3752_v23  ;;  %v3080_v51 = vpack.i.bf16 %v4117_v4, %v4103_v42  ;;  %v4199_v33 = vpop.permute.xlu0 %3006  ;;  %v3110_v57 = vpack.i.bf16 %v4103_v42, %v29_v24  ;;  %v2998_v42 = vunpack.i.l.bf16 %v4190_v43 }
  0xe7   :  { %2509 = vmatmul.msk.f32.gmra.mxu3 %vm799_vm2, %v3752_v23  ;;  %1327 = vmatpush.msrb.mxu1 %v3457_v44  ;;  %v2959_v44 = vunpack.i.h.bf16 %v3942_v12  ;;  %v56_v12 = vld [vmem:[%s6288_s1 + $0x168] sm:$0xff]  ;;  %v3008_v31 = vunpack.i.l.bf16 %v4199_v33 }
  0xe8   :  { %3071 = vrot.lane.b32.xlu1 %v3070_v19, %s3253_s21  ;;  %3081 = vrot.lane.b32.xlu0 %v3080_v51, %s3253_s21  ;;  %v3045_v30 = vpack.i.bf16 %v29_v24, %v56_v12  ;;  %v3095_v39 = vpack.i.bf16 %v56_v12, %v4058_v63  ;;  %v362_v63 = vsel %vm326_vm1, %v2979_v48, %v2983_v2 }
  0xe9   :  { %1328 = vmatpush.msrb.mxu1 %v3480_v50  ;;  %v699_v50 = vsel %vm636_vm0, %v2953_v6, %v2969_v59  ;;  %v673_v28 = vsel %vm636_vm0, %v2958_v17, %v2959_v44  ;;  %1377 = vmatpush.msrb.mxu2 %v362_v63  ;;  %v700_v17 = vsel %vm636_vm0, %v2969_v59, %v3008_v31 }
  0xea   :  { %1479 = vmatpush.msrb.mxu0 %v699_v50  ;;  %1427 = vmatpush.msrb.mxu3 %v673_v28  ;;  %v338_v59 = vsel %vm326_vm1, %v2994_v10, %v2998_v42 }
  0xeb   :  { %2521 = vmatmul.msk.f32.gmra.mxu0 %vm799_vm2, %v3752_v23  ;;  %3046 = vrot.lane.b32.xlu2 %v3045_v30, %s3253_s21  ;;  %v3186_v30 = vld [vmem:[%s6288_s1 + $0x210] sm:$0xff] }
  0xec   :  { %2485 = vmatmul.msk.f32.gmra.mxu1 %vm799_vm2, %v3752_v23  ;;  %1428 = vmatpush.msrb.mxu3 %v648_v13  ;;  %v3189_v13 = vld [vmem:[%s6288_s1 + $0x58] sm:$0xff] }
  0xee   :  { %2498 = vmatmul.msk.f32.gmra.mxu2 %vm799_vm2, %v3801_v36  ;;  %1429 = vmatpush.msrb.mxu3 %v388_v56 }
  0xef   :  { %2510 = vmatmul.msk.f32.gmra.mxu3 %vm799_vm2, %v3801_v36 }
  0xf0   :  { %3096 = vrot.lane.b32.xlu0 %v3095_v39, %s3254_s24  ;;  %1430 = vmatpush.msrb.mxu3 %v363_v62  ;;  %v4399_v62 = vld [vmem:[%s6288_s1 + $0xa8] sm:$0xff] }
  0xf2   :  { %1431 = vmatpush.msrb.mxu3 %v338_v59  ;;  %v3100_v59 = vpack.i.bf16 %v4218_v45, %v4093_v55  ;;  %v4460_v55 = vld [vmem:[%s6288_s1 + $0x268] sm:$0xff] }
  0xf3   :  { %2522 = vmatmul.msk.f32.gmra.mxu0 %vm799_vm2, %v3801_v36 }
  0xf4   :  { %2486 = vmatmul.msk.f32.gmra.mxu1 %vm799_vm2, %v3801_v36  ;;  %1432 = vmatpush.msrb.mxu3 %v3185_v54  ;;  %v3009_v54 = vunpack.i.h.bf16 %v4199_v33 }
  0xf6   :  { %2499 = vmatmul.msk.f32.gmra.mxu2 %vm799_vm2, %v3669_v3  ;;  %1433 = vmatpush.msrb.mxu3 %v3187_v35 }
  0xf7   :  { %2511 = vmatmul.msk.f32.gmra.mxu3 %vm799_vm2, %v3669_v3 }
  0xf8   :  { %v4168_v18 = vpop.permute.xlu2 %2986  ;;  %3111 = vrot.lane.b32.xlu0 %v3110_v57, %s3254_s24  ;;  %1434 = vmatpush.msrb.mxu3 %v3189_v13 }
  0xf9   :  { %v2989_v60 = vunpack.i.h.bf16 %v4168_v18  ;;  %v2988_v20 = vunpack.i.l.bf16 %v4168_v18 }
  0xfb   :  { %2523 = vmatmul.msk.f32.gmra.mxu0 %vm799_vm2, %v3669_v3  ;;  %v674_v32 = vsel %vm636_vm0, %v2959_v44, %v2988_v20  ;;  %v649_v26 = vsel %vm636_vm0, %v2968_v22, %v2989_v60 }
  0xfc   :  { %2487 = vmatmul.msk.f32.gmra.mxu1 %vm799_vm2, %v3669_v3  ;;  %1480 = vmatpush.msrb.mxu0 %v674_v32  ;;  %v3060_v3 = vpack.i.bf16 %v4006_v40, %v3922_v5 }
  0xfe   :  { %2500 = vmatmul.msk.f32.gmra.mxu2 %vm799_vm2, %v3761_v8  ;;  %1481 = vmatpush.msrb.mxu0 %v649_v26  ;;  %v337_v26 = vsel %vm326_vm1, %v2993_v46, %v2994_v10 }
  0xff   :  { %2512 = vmatmul.msk.f32.gmra.mxu3 %vm799_vm2, %v3761_v8  ;;  %3061 = vrot.lane.b32.xlu2 %v3060_v3, %s3254_s24 }
 0x100   :  { %1378 = vmatpush.msrb.mxu2 %v337_v26 }
 0x102   :  { %1379 = vmatpush.msrb.mxu2 %v3191_v0 }
 0x103   :  { %2524 = vmatmul.msk.f32.gmra.mxu0 %vm799_vm2, %v3761_v8 }
 0x104   :  { %2488 = vmatmul.msk.f32.gmra.mxu1 %vm799_vm2, %v3761_v8  ;;  %v2999_v8 = vunpack.i.h.bf16 %v4190_v43 }
 0x106   :  { %2501 = vmatmul.msk.f32.gmra.mxu2 %vm799_vm2, %v3806_v52  ;;  %v389_v5 = vsel %vm326_vm1, %v2978_v34, %v2999_v8  ;;  %v3188_v34 = vld [vmem:[%s6288_s1 + $0x138] sm:$0xff] }
 0x107   :  { %2513 = vmatmul.msk.f32.gmra.mxu3 %vm799_vm2, %v3806_v52  ;;  %1482 = vmatpush.msrb.mxu0 %v389_v5 }
 0x10b   :  { %2525 = vmatmul.msk.f32.gmra.mxu0 %vm799_vm2, %v3806_v52 }
 0x10c   :  { %2489 = vmatmul.msk.f32.gmra.mxu1 %vm799_vm2, %v3806_v52  ;;  %v3075_v52 = vpack.i.bf16 %v4223_v9, %v4218_v45  ;;  %v4465_v45 = vld [vmem:[%s6288_s1 + $0x270] sm:$0xff] }
 0x10e   :  { %2538 = vmatmul.msk.f32.vlgmr.msra.gmra.mxu2 %vm799_vm2, %v3714_v7  ;;  %v4230_v48 = vpop.permute.xlu1 %3011  ;;  %3076 = vrot.lane.b32.xlu2 %v3075_v52, %s3253_s21 }
 0x10f   :  { %2550 = vmatmul.msk.f32.vlgmr.msra.gmra.mxu3 %vm799_vm2, %v3714_v7  ;;  %v3014_v53 = vunpack.i.h.bf16 %v4230_v48  ;;  %v4238_v6 = vpop.permute.xlu0 %3021 }
 0x110   :  { %v3023_v19 = vunpack.i.l.bf16 %v4238_v6 }
 0x111   :  { %v675_v58 = vsel %vm636_vm0, %v2988_v20, %v3014_v53 }
 0x112   :  { %v4246_v51 = vpop.permute.xlu2 %3001  ;;  %v650_v28 = vsel %vm636_vm0, %v2989_v60, %v3023_v19 }
 0x113   :  { %2562 = vmatmul.msk.f32.vlgmr.msra.gmra.mxu0 %vm799_vm2, %v3714_v7  ;;  %v3004_v44 = vunpack.i.h.bf16 %v4246_v51  ;;  %v3003_v25 = vunpack.i.l.bf16 %v4246_v51  ;;  %v3194_v51 = vld [vmem:[%s6288_s1 + $0x218] sm:$0xff] }
 0x114   :  { %2526 = vmatmul.msk.f32.vlgmr.msra.gmra.mxu1 %vm799_vm2, %v3714_v7 }
 0x115   :  { %1532 = vmatpush.msra.mxu1 %v700_v17  ;;  %v364_v50 = vsel %vm326_vm1, %v2984_v49, %v3003_v25  ;;  %v339_v7 = vsel %vm326_vm1, %v2998_v42, %v3004_v44  ;;  %v871_v24 = vpop.f32.mrf.mxu2  ;;  %v3192_v49 = vld [vmem:[%s6288_s1 + $0x128] sm:$0xff] }
 0x116   :  { %2539 = vmatmul.msk.f32.gmra.mxu2 %vm799_vm2, %v3776_v47  ;;  %1483 = vmatpush.msrb.mxu0 %v364_v50  ;;  %2312 = vst [vmem:[%s6290_s2 + $0x4b0] sm:$0xff] %v871_v24 }
 0x117   :  { %2551 = vmatmul.msk.f32.gmra.mxu3 %vm799_vm2, %v3776_v47  ;;  %v853_v41 = vpop.f32.mrf.mxu0  ;;  %v862_v15 = vpop.f32.mrf.mxu1  ;;  %1533 = vmatpush.msra.mxu1 %v675_v58  ;;  %v3196_v58 = vld [vmem:[%s6288_s1 + $0x68] sm:$0xff] }
 0x118   :  { %2161 = vst [vmem:[%s6290_s2] sm:$0xff] %v853_v41  ;;  %1484 = vmatpush.msrb.mxu0 %v339_v7  ;;  %3091 = vrot.lane.b32.xlu2 %v3090_v29, %s3254_s24 }
 0x119   :  { %2237 = vst [vmem:[%s6290_s2 + $0x258] sm:$0xff] %v862_v15  ;;  %v880_v12 = vpop.f32.mrf.mxu3  ;;  %1534 = vmatpush.msra.mxu1 %v650_v28  ;;  %1380 = vmatpush.msrb.mxu2 %v3192_v49  ;;  %v3125_v28 = vpack.i.bf16 %v4465_v45, %v4460_v55 }
 0x11a   :  { %v4290_v22 = vpop.permute.xlu2 %3016  ;;  %1485 = vmatpush.msrb.mxu0 %v3186_v30  ;;  %2387 = vst [vmem:[%s6290_s2 + $0x708] sm:$0xff] %v880_v12  ;;  %v3013_v30 = vunpack.i.l.bf16 %v4230_v48  ;;  %v4570_v48 = vld [vmem:[%s6288_s1 + $0xb0] sm:$0xff] }
 0x11b   :  { %2563 = vmatmul.msk.f32.gmra.mxu0 %vm799_vm2, %v3776_v47  ;;  %3126 = vrot.lane.b32.xlu0 %v3125_v28, %s3253_s21  ;;  %v3018_v35 = vunpack.i.l.bf16 %v4290_v22 }
 0x11c   :  { %2527 = vmatmul.msk.f32.gmra.mxu1 %vm799_vm2, %v3776_v47  ;;  %1486 = vmatpush.msrb.mxu0 %v3188_v34 }
 0x11e   :  { %2540 = vmatmul.msk.f32.gmra.mxu2 %vm799_vm2, %v3829_v1  ;;  %1487 = vmatpush.msrb.mxu0 %v3190_v37 }
 0x11f   :  { %2552 = vmatmul.msk.f32.gmra.mxu3 %vm799_vm2, %v3829_v1  ;;  %v856_v47 = vpop.f32.mrf.mxu0  ;;  %v865_v38 = vpop.f32.mrf.mxu1 }
 0x120   :  { %2187 = vst [vmem:[%s6290_s2 + $0xc8] sm:$0xff] %v856_v47  ;;  %v874_v56 = vpop.f32.mrf.mxu2  ;;  %v4522_v47 = vld [vmem:[%s6288_s1 + $0xc0] sm:$0xff] }
 0x121   :  { %2262 = vst [vmem:[%s6290_s2 + $0x320] sm:$0xff] %v865_v38  ;;  %v883_v18 = vpop.f32.mrf.mxu3 }
 0x122   :  { %2337 = vst [vmem:[%s6290_s2 + $0x578] sm:$0xff] %v874_v56  ;;  %v4327_v60 = vpop.permute.xlu2 %3031 }
 0x123   :  { %2412 = vst [vmem:[%s6290_s2 + $0x7d0] sm:$0xff] %v883_v18  ;;  %2564 = vmatmul.msk.f32.gmra.mxu0 %vm799_vm2, %v3829_v1  ;;  %v3033_v20 = vunpack.i.l.bf16 %v4327_v60  ;;  %v4335_v27 = vpop.permute.xlu0 %3036 }
 0x124   :  { %2528 = vmatmul.msk.f32.gmra.mxu1 %vm799_vm2, %v3829_v1  ;;  %v3039_v32 = vunpack.i.h.bf16 %v4335_v27 }
 0x125   :  { %v390_v39 = vsel %vm326_vm1, %v2999_v8, %v3033_v20  ;;  %v3193_v8 = vld [vmem:[%s6288_s1 + $0x50] sm:$0xff] }
 0x126   :  { %2541 = vmatmul.msk.f32.gmra.mxu2 %vm799_vm2, %v3719_v61  ;;  %1535 = vmatpush.msra.mxu1 %v390_v39  ;;  %v365_v1 = vsel %vm326_vm1, %v3003_v25, %v3039_v32  ;;  %v3195_v25 = vld [vmem:[%s6288_s1 + $0x140] sm:$0xff] }
 0x127   :  { %2553 = vmatmul.msk.f32.gmra.mxu3 %vm799_vm2, %v3719_v61  ;;  %1381 = vmatpush.msrb.mxu2 %v3193_v8 }
 0x128   :  { %v859_v46 = vpop.f32.mrf.mxu0  ;;  %v877_v43 = vpop.f32.mrf.mxu2  ;;  %1536 = vmatpush.msra.mxu1 %v365_v1  ;;  %v3019_v1 = vunpack.i.h.bf16 %v4290_v22  ;;  %v701_v22 = vsel %vm636_vm0, %v3008_v31, %v3009_v54 }
 0x129   :  { %2212 = vst [vmem:[%s6290_s2 + $0x190] sm:$0xff] %v859_v46  ;;  %v868_v3 = vpop.f32.mrf.mxu1  ;;  %v886_v57 = vpop.f32.mrf.mxu3  ;;  %v676_v46 = vsel %vm636_vm0, %v3014_v53, %v3018_v35  ;;  %1585 = vmatpush.msra.mxu2 %v701_v22  ;;  %v60_v53 = vld [vmem:[%s6288_s1 + $0x188] sm:$0xff] }
 0x12a   :  { %2287 = vst [vmem:[%s6290_s2 + $0x3e8] sm:$0xff] %v868_v3  ;;  %v677_v33 = vsel %vm636_vm0, %v3018_v35, %v3019_v1  ;;  %v4676_v35 = vld [vmem:[%s6289_s0 + $0x58] sm:$0xff] }
 0x12b   :  { %2362 = vst [vmem:[%s6290_s2 + $0x640] sm:$0xff] %v877_v43  ;;  %2565 = vmatmul.msk.f32.gmra.mxu0 %vm799_vm2, %v3719_v61  ;;  %v4376_v2 = vpop.permute.xlu0 %3051  ;;  %v702_v43 = vsel %vm636_vm0, %v3009_v54, %v3013_v30  ;;  %1586 = vmatpush.msra.mxu2 %v676_v46 }
 0x12c   :  { %2437 = vst [vmem:[%s6290_s2 + $0x898] sm:$0xff] %v886_v57  ;;  %2529 = vmatmul.msk.f32.gmra.mxu1 %vm799_vm2, %v3719_v61  ;;  %v3053_v5 = vunpack.i.l.bf16 %v4376_v2  ;;  %v4404_v61 = vld [vmem:[%s6288_s1 + $0x260] sm:$0xff]  ;;  %1638 = vmatpush.msra.mxu3 %v702_v43  ;;  %v3024_v57 = vunpack.i.h.bf16 %v4238_v6 }
 0x12d   :  { %v3085_v10 = vpack.i.bf16 %v4404_v61, %v4399_v62 }
 0x12e   :  { %2542 = vmatmul.msk.f32.gmra.mxu2 %vm799_vm2, %v3781_v21  ;;  %v340_v63 = vsel %vm326_vm1, %v3004_v44, %v3053_v5  ;;  %1639 = vmatpush.msra.mxu3 %v677_v33 }
 0x12f   :  { %2554 = vmatmul.msk.f32.gmra.mxu3 %vm799_vm2, %v3781_v21  ;;  %1537 = vmatpush.msra.mxu1 %v340_v63 }
 0x130   :  { %v1065_v52 = vpop.f32.mrf.mxu0  ;;  %3086 = vrot.lane.b32.xlu1 %v3085_v10, %s3253_s21 }
 0x131   :  { %v906_v42 = vpop.f32.mrf.mxu1  ;;  %v959_v17 = vpop.f32.mrf.mxu2  ;;  %2165 = vst [vmem:[%s6290_s2 + $0x20] sm:$0xff] %v1065_v52  ;;  %1538 = vmatpush.msra.mxu1 %v3194_v51  ;;  %v3105_v52 = vpack.i.bf16 %v4570_v48, %v60_v53  ;;  %v3034_v51 = vunpack.i.h.bf16 %v4327_v60 }
 0x132   :  { %2162 = vst [vmem:[%s6290_s2 + $0x8] sm:$0xff] %v906_v42  ;;  %v1012_v44 = vpop.f32.mrf.mxu3 }
 0x133   :  { %2163 = vst [vmem:[%s6290_s2 + $0x10] sm:$0xff] %v959_v17  ;;  %2566 = vmatmul.msk.f32.gmra.mxu0 %vm799_vm2, %v3781_v21  ;;  %1539 = vmatpush.msra.mxu1 %v3195_v25 }
 0x134   :  { %2164 = vst [vmem:[%s6290_s2 + $0x18] sm:$0xff] %v1012_v44  ;;  %2530 = vmatmul.msk.f32.gmra.mxu1 %vm799_vm2, %v3781_v21  ;;  %3106 = vrot.lane.b32.xlu2 %v3105_v52, %s3253_s21  ;;  %v3038_v44 = vunpack.i.l.bf16 %v4335_v27 }
 0x135   :  { %1540 = vmatpush.msra.mxu1 %v3196_v58 }
 0x136   :  { %2543 = vmatmul.msk.f32.gmra.mxu2 %vm799_vm2, %v3836_v14  ;;  %v392_v6 = vsel %vm326_vm1, %v3034_v51, %v3038_v44 }
 0x137   :  { %2555 = vmatmul.msk.f32.gmra.mxu3 %vm799_vm2, %v3836_v14 }
 0x138   :  { %v1068_v29 = vpop.f32.mrf.mxu0  ;;  %3101 = vrot.lane.b32.xlu1 %v3100_v59, %s3254_s24  ;;  %v651_v59 = vsel %vm636_vm0, %v3023_v19, %v3024_v57 }
 0x139   :  { %v909_v50 = vpop.f32.mrf.mxu1  ;;  %v962_v7 = vpop.f32.mrf.mxu2  ;;  %2191 = vst [vmem:[%s6290_s2 + $0xe8] sm:$0xff] %v1068_v29  ;;  %v4608_v29 = vld [vmem:[%s6289_s0 + $0x48] sm:$0xff]  ;;  %1587 = vmatpush.msra.mxu2 %v651_v59 }
 0x13a   :  { %2188 = vst [vmem:[%s6290_s2 + $0xd0] sm:$0xff] %v909_v50  ;;  %v1015_v21 = vpop.f32.mrf.mxu3 }
 0x13b   :  { %2189 = vst [vmem:[%s6290_s2 + $0xd8] sm:$0xff] %v962_v7  ;;  %2567 = vmatmul.msk.f32.gmra.mxu0 %vm799_vm2, %v3836_v14 }
 0x13c   :  { %2190 = vst [vmem:[%s6290_s2 + $0xe0] sm:$0xff] %v1015_v21  ;;  %2531 = vmatmul.msk.f32.gmra.mxu1 %vm799_vm2, %v3836_v14  ;;  %v3115_v14 = vpack.i.bf16 %v4098_v16, %v4117_v4  ;;  %v4500_v16 = vld [vmem:[%s6288_s1 + $0x190] sm:$0xff]  ;;  %v4505_v4 = vld [vmem:[%s6288_s1 + $0x278] sm:$0xff] }
 0x13d   :  { %v3130_v37 = vpack.i.bf16 %v4500_v16, %v4505_v4 }
 0x13e   :  { %2544 = vmatmul.msk.f32.gmra.mxu2 %vm799_vm2, %v3658_v11 }
 0x13f   :  { %2556 = vmatmul.msk.f32.gmra.mxu3 %vm799_vm2, %v3658_v11 }
 0x140   :  { %v1071_v41 = vpop.f32.mrf.mxu0  ;;  %3116 = vrot.lane.b32.xlu1 %v3115_v14, %s3254_s24  ;;  %v3155_v14 = vpack.i.bf16 %v60_v53, %v4465_v45  ;;  %v3120_v45 = vpack.i.bf16 %v4399_v62, %v4223_v9  ;;  %v4739_v53 = vld [vmem:[%s6289_s0] sm:$0xff] }
 0x141   :  { %v912_v15 = vpop.f32.mrf.mxu1  ;;  %v965_v24 = vpop.f32.mrf.mxu2  ;;  %2216 = vst [vmem:[%s6290_s2 + $0x1b0] sm:$0xff] %v1071_v41 }
 0x142   :  { %2213 = vst [vmem:[%s6290_s2 + $0x198] sm:$0xff] %v912_v15  ;;  %v1018_v12 = vpop.f32.mrf.mxu3  ;;  %v4515_v13 = vpop.permute.xlu1 %3026  ;;  %3121 = vrot.lane.b32.xlu2 %v3120_v45, %s3254_s24 }
 0x143   :  { %2214 = vst [vmem:[%s6290_s2 + $0x1a0] sm:$0xff] %v965_v24  ;;  %2568 = vmatmul.msk.f32.gmra.mxu0 %vm799_vm2, %v3658_v11  ;;  %v3029_v39 = vunpack.i.h.bf16 %v4515_v13  ;;  %v3028_v8 = vunpack.i.l.bf16 %v4515_v13 }
 0x144   :  { %2215 = vst [vmem:[%s6290_s2 + $0x1a8] sm:$0xff] %v1018_v12  ;;  %2532 = vmatmul.msk.f32.gmra.mxu1 %vm799_vm2, %v3658_v11  ;;  %v4510_v11 = vld [vmem:[%s6288_s1 + $0xb8] sm:$0xff] }
 0x145   :  { %v3140_v18 = vpack.i.bf16 %v4522_v47, %v4510_v11  ;;  %v4549_v0 = vpop.permute.xlu2 %3046  ;;  %v652_v25 = vsel %vm636_vm0, %v3024_v57, %v3028_v8  ;;  %v4645_v28 = vpop.permute.xlu0 %3066 }
 0x146   :  { %2545 = vmatmul.msk.f32.gmra.mxu2 %vm799_vm2, %v3752_v23  ;;  %v3048_v3 = vunpack.i.l.bf16 %v4549_v0  ;;  %v3049_v63 = vunpack.i.h.bf16 %v4549_v0  ;;  %1640 = vmatpush.msra.mxu3 %v652_v25  ;;  %v3068_v57 = vunpack.i.l.bf16 %v4645_v28  ;;  %v3202_v0 = vld [vmem:[%s6288_s1 + $0x228] sm:$0xff] }
 0x147   :  { %2557 = vmatmul.msk.f32.gmra.mxu3 %vm799_vm2, %v3752_v23  ;;  %3141 = vrot.lane.b32.xlu0 %v3140_v18, %s3253_s21 }
 0x148   :  { %v1074_v34 = vpop.f32.mrf.mxu0  ;;  %3131 = vrot.lane.b32.xlu1 %v3130_v37, %s3253_s21  ;;  %v678_v31 = vsel %vm636_vm0, %v3019_v1, %v3048_v3  ;;  %v653_v58 = vsel %vm636_vm0, %v3028_v8, %v3049_v63  ;;  %1641 = vmatpush.msra.mxu3 %v392_v6  ;;  %v3054_v8 = vunpack.i.h.bf16 %v4376_v2  ;;  %v704_v25 = vsel %vm636_vm0, %v3029_v39, %v3068_v57  ;;  %v3212_v2 = vld [vmem:[%s6288_s1 + $0x220] sm:$0xff] }
 0x149   :  { %v915_v38 = vpop.f32.mrf.mxu1  ;;  %v968_v56 = vpop.f32.mrf.mxu2  ;;  %2241 = vst [vmem:[%s6290_s2 + $0x278] sm:$0xff] %v1074_v34  ;;  %v3170_v34 = vpack.i.bf16 %v4510_v11, %v4570_v48  ;;  %v4729_v48 = vld [vmem:[%s6288_s1 + $0x1a0] sm:$0xff] }
 0x14a   :  { %2238 = vst [vmem:[%s6290_s2 + $0x260] sm:$0xff] %v915_v38  ;;  %v1021_v26 = vpop.f32.mrf.mxu3  ;;  %v4620_v50 = vpop.permute.xlu1 %3041 }
 0x14b   :  { %2239 = vst [vmem:[%s6290_s2 + $0x268] sm:$0xff] %v968_v56  ;;  %2569 = vmatmul.msk.f32.gmra.mxu0 %vm799_vm2, %v3752_v23  ;;  %v3044_v37 = vunpack.i.h.bf16 %v4620_v50  ;;  %v3043_v9 = vunpack.i.l.bf16 %v4620_v50  ;;  %v4794_v50 = vld [vmem:[%s6289_s0 + $0x8] sm:$0xff] }
 0x14c   :  { %2240 = vst [vmem:[%s6290_s2 + $0x270] sm:$0xff] %v1021_v26  ;;  %2533 = vmatmul.msk.f32.gmra.mxu1 %vm799_vm2, %v3752_v23  ;;  %v703_v23 = vsel %vm636_vm0, %v3013_v30, %v3029_v39 }
 0x14d   :  { %1691 = vmatpush.msra.mxu0 %v703_v23  ;;  %v366_v23 = vsel %vm326_vm1, %v3039_v32, %v3043_v9  ;;  %v367_v33 = vsel %vm326_vm1, %v3043_v9, %v3044_v37  ;;  %v3208_v9 = vld [vmem:[%s6288_s1 + $0x80] sm:$0xff] }
 0x14e   :  { %2546 = vmatmul.msk.f32.gmra.mxu2 %vm799_vm2, %v3801_v36  ;;  %1642 = vmatpush.msra.mxu3 %v367_v33 }
 0x14f   :  { %2558 = vmatmul.msk.f32.gmra.mxu3 %vm799_vm2, %v3801_v36  ;;  %1692 = vmatpush.msra.mxu0 %v678_v31  ;;  %v4724_v31 = vld [vmem:[%s6288_s1 + $0x198] sm:$0xff] }
 0x150   :  { %v1077_v49 = vpop.f32.mrf.mxu0  ;;  %3156 = vrot.lane.b32.xlu0 %v3155_v14, %s3254_s24  ;;  %v3135_v32 = vpack.i.bf16 %v4729_v48, %v4724_v31  ;;  %v3203_v14 = vld [vmem:[%s6288_s1 + $0x230] sm:$0xff] }
 0x151   :  { %v918_v10 = vpop.f32.mrf.mxu1  ;;  %v971_v42 = vpop.f32.mrf.mxu2  ;;  %2266 = vst [vmem:[%s6290_s2 + $0x340] sm:$0xff] %v1077_v49  ;;  %1693 = vmatpush.msra.mxu0 %v653_v58 }
 0x152   :  { %2263 = vst [vmem:[%s6290_s2 + $0x328] sm:$0xff] %v918_v10  ;;  %v1024_v17 = vpop.f32.mrf.mxu3  ;;  %v4659_v30 = vpop.permute.xlu1 %3056  ;;  %3136 = vrot.lane.b32.xlu2 %v3135_v32, %s3253_s21  ;;  %v3213_v32 = vld [vmem:[%s6288_s1 + $0x148] sm:$0xff] }
 0x153   :  { %2264 = vst [vmem:[%s6290_s2 + $0x330] sm:$0xff] %v971_v42  ;;  %2570 = vmatmul.msk.f32.gmra.mxu0 %vm799_vm2, %v3801_v36  ;;  %v3059_v38 = vunpack.i.h.bf16 %v4659_v30  ;;  %v3058_v52 = vunpack.i.l.bf16 %v4659_v30  ;;  %v3205_v30 = vld [vmem:[%s6288_s1 + $0x158] sm:$0xff] }
 0x154   :  { %2265 = vst [vmem:[%s6290_s2 + $0x338] sm:$0xff] %v1024_v17  ;;  %2534 = vmatmul.msk.f32.gmra.mxu1 %vm799_vm2, %v3801_v36  ;;  %v391_v36 = vsel %vm326_vm1, %v3033_v20, %v3034_v51  ;;  %v4641_v20 = vld [vmem:[%s6289_s0 + $0x50] sm:$0xff] }
 0x155   :  { %1588 = vmatpush.msra.mxu2 %v391_v36  ;;  %v393_v43 = vsel %vm326_vm1, %v3038_v44, %v3059_v38  ;;  %v342_v6 = vsel %vm326_vm1, %v3054_v8, %v3058_v52 }
 0x156   :  { %2547 = vmatmul.msk.f32.gmra.mxu2 %vm799_vm2, %v4608_v29  ;;  %1694 = vmatpush.msra.mxu0 %v393_v43  ;;  %v3210_v43 = vld [vmem:[%s6288_s1 + $0x160] sm:$0xff] }
 0x157   :  { %2559 = vmatmul.msk.f32.gmra.mxu3 %vm799_vm2, %v4608_v29  ;;  %1589 = vmatpush.msra.mxu2 %v366_v23  ;;  %v4898_v23 = vld [vmem:[%s6289_s0 + $0x18] sm:$0xff] }
 0x158   :  { %v1080_v19 = vpop.f32.mrf.mxu0  ;;  %3171 = vrot.lane.b32.xlu0 %v3170_v34, %s3254_s24  ;;  %1643 = vmatpush.msra.mxu3 %v342_v6  ;;  %v3206_v34 = vld [vmem:[%s6288_s1 + $0x78] sm:$0xff]  ;;  %v4967_v6 = vld [vmem:[%s6289_s0 + $0x28] sm:$0xff] }
 0x159   :  { %v921_v7 = vpop.f32.mrf.mxu1  ;;  %v974_v21 = vpop.f32.mrf.mxu2  ;;  %2291 = vst [vmem:[%s6290_s2 + $0x408] sm:$0xff] %v1080_v19 }
 0x15a   :  { %2288 = vst [vmem:[%s6290_s2 + $0x3f0] sm:$0xff] %v921_v7  ;;  %v1027_v60 = vpop.f32.mrf.mxu3  ;;  %v4650_v15 = vpop.permute.xlu2 %3061  ;;  %1644 = vmatpush.msra.mxu3 %v3202_v0 }
 0x15b   :  { %2289 = vst [vmem:[%s6290_s2 + $0x3f8] sm:$0xff] %v974_v21  ;;  %2571 = vmatmul.msk.f32.gmra.mxu0 %vm799_vm2, %v4608_v29  ;;  %v4688_v56 = vpop.permute.xlu0 %3081  ;;  %v3063_v1 = vunpack.i.l.bf16 %v4650_v15  ;;  %v4710_v46 = vpop.permute.xlu1 %3071  ;;  %v3064_v42 = vunpack.i.h.bf16 %v4650_v15  ;;  %v341_v15 = vsel %vm326_vm1, %v3053_v5, %v3054_v8 }
 0x15c   :  { %2290 = vst [vmem:[%s6290_s2 + $0x400] sm:$0xff] %v1027_v60  ;;  %2535 = vmatmul.msk.f32.gmra.mxu1 %vm799_vm2, %v4608_v29  ;;  %v3074_v49 = vunpack.i.h.bf16 %v4710_v46  ;;  %v3083_v58 = vunpack.i.l.bf16 %v4688_v56  ;;  %1590 = vmatpush.msra.mxu2 %v341_v15 }
 0x15d   :  { %v368_v27 = vsel %vm326_vm1, %v3044_v37, %v3063_v1  ;;  %v343_v19 = vsel %vm326_vm1, %v3058_v52, %v3064_v42  ;;  %v4854_v37 = vld [vmem:[%s6289_s0 + $0x10] sm:$0xff]  ;;  %v4933_v52 = vld [vmem:[%s6289_s0 + $0x20] sm:$0xff] }
 0x15e   :  { %2548 = vmatmul.msk.f32.gmra.mxu2 %vm799_vm2, %v4641_v20  ;;  %1695 = vmatpush.msra.mxu0 %v368_v27  ;;  %v679_v36 = vsel %vm636_vm0, %v3048_v3, %v3074_v49  ;;  %v3150_v3 = vpack.i.bf16 %v4460_v55, %v4404_v61  ;;  %v654_v7 = vsel %vm636_vm0, %v3049_v63, %v3083_v58 }
 0x15f   :  { %2560 = vmatmul.msk.f32.gmra.mxu3 %vm799_vm2, %v4641_v20  ;;  %1591 = vmatpush.msra.mxu2 %v3212_v2 }
 0x160   :  { %v1083_v41 = vpop.f32.mrf.mxu0  ;;  %1696 = vmatpush.msra.mxu0 %v343_v19  ;;  %3151 = vrot.lane.b32.xlu2 %v3150_v3, %s3254_s24 }
 0x161   :  { %v924_v24 = vpop.f32.mrf.mxu1  ;;  %v977_v12 = vpop.f32.mrf.mxu2  ;;  %2316 = vst [vmem:[%s6290_s2 + $0x4d0] sm:$0xff] %v1083_v41  ;;  %1592 = vmatpush.msra.mxu2 %v3213_v32 }
 0x162   :  { %2313 = vst [vmem:[%s6290_s2 + $0x4b8] sm:$0xff] %v924_v24  ;;  %v1030_v54 = vpop.f32.mrf.mxu3  ;;  %1697 = vmatpush.msra.mxu0 %v3203_v14  ;;  %v3204_v24 = vld [vmem:[%s6288_s1 + $0x150] sm:$0xff] }
 0x163   :  { %2314 = vst [vmem:[%s6290_s2 + $0x4c0] sm:$0xff] %v977_v12  ;;  %2572 = vmatmul.msk.f32.gmra.mxu0 %vm799_vm2, %v4641_v20  ;;  %v4781_v39 = vpop.permute.xlu0 %3096  ;;  %1645 = vmatpush.msra.mxu3 %v3204_v24  ;;  %v3069_v24 = vunpack.i.h.bf16 %v4645_v28 }
 0x164   :  { %2315 = vst [vmem:[%s6290_s2 + $0x4c8] sm:$0xff] %v1030_v54  ;;  %2536 = vmatmul.msk.f32.gmra.mxu1 %vm799_vm2, %v4641_v20  ;;  %v3099_v55 = vunpack.i.h.bf16 %v4781_v39  ;;  %1698 = vmatpush.msra.mxu0 %v3205_v30 }
 0x165   :  { %1646 = vmatpush.msra.mxu3 %v3206_v34 }
 0x166   :  { %2549 = vmatmul.msk.f32.gmra.mxu2 %vm799_vm2, %v4676_v35  ;;  %v369_v54 = vsel %vm326_vm1, %v3063_v1, %v3099_v55  ;;  %1699 = vmatpush.msra.mxu0 %v3208_v9 }
 0x167   :  { %2561 = vmatmul.msk.f32.gmra.mxu3 %vm799_vm2, %v4676_v35 }
 0x168   :  { %v1086_v62 = vpop.f32.mrf.mxu0  ;;  %v4698_v22 = vpop.permute.xlu2 %3076 }
 0x169   :  { %v927_v18 = vpop.f32.mrf.mxu1  ;;  %v980_v26 = vpop.f32.mrf.mxu2  ;;  %2341 = vst [vmem:[%s6290_s2 + $0x598] sm:$0xff] %v1086_v62 }
 0x16a   :  { %2338 = vst [vmem:[%s6290_s2 + $0x580] sm:$0xff] %v927_v18  ;;  %v1033_v11 = vpop.f32.mrf.mxu3 }
 0x16b   :  { %2339 = vst [vmem:[%s6290_s2 + $0x588] sm:$0xff] %v980_v26  ;;  %2573 = vmatmul.msk.f32.gmra.mxu0 %vm799_vm2, %v4676_v35  ;;  %v4837_v12 = vpop.permute.xlu0 %3111 }
 0x16c   :  { %2340 = vst [vmem:[%s6290_s2 + $0x590] sm:$0xff] %v1033_v11  ;;  %2537 = vmatmul.msk.f32.gmra.mxu1 %vm799_vm2, %v4676_v35  ;;  %v3113_v45 = vunpack.i.l.bf16 %v4837_v12  ;;  %v3209_v11 = vld [vmem:[%s6288_s1 + $0x238] sm:$0xff] }
 0x16e   :  { %2586 = vmatmul.msk.f32.vlgmr.msrb.gmra.mxu2 %vm799_vm2, %v4739_v53  ;;  %v344_v62 = vsel %vm326_vm1, %v3064_v42, %v3113_v45 }
 0x16f   :  { %2598 = vmatmul.msk.f32.vlgmr.msrb.gmra.mxu3 %vm799_vm2, %v4739_v53 }
 0x170   :  { %v1089_v10 = vpop.f32.mrf.mxu0 }
 0x171   :  { %v930_v17 = vpop.f32.mrf.mxu1  ;;  %v983_v51 = vpop.f32.mrf.mxu2  ;;  %2366 = vst [vmem:[%s6290_s2 + $0x660] sm:$0xff] %v1089_v10 }
 0x172   :  { %2363 = vst [vmem:[%s6290_s2 + $0x648] sm:$0xff] %v930_v17  ;;  %v1036_v44 = vpop.f32.mrf.mxu3  ;;  %v4763_v59 = vpop.permute.xlu2 %3091 }
 0x173   :  { %2364 = vst [vmem:[%s6290_s2 + $0x650] sm:$0xff] %v983_v51  ;;  %2610 = vmatmul.msk.f32.vlgmr.msrb.gmra.mxu0 %vm799_vm2, %v4739_v53  ;;  %v3093_v13 = vunpack.i.l.bf16 %v4763_v59 }
 0x174   :  { %2365 = vst [vmem:[%s6290_s2 + $0x658] sm:$0xff] %v1036_v44  ;;  %2574 = vmatmul.msk.f32.vlgmr.msrb.gmra.mxu1 %vm799_vm2, %v4739_v53  ;;  %v4958_v44 = vld [vmem:[%s6288_s1 + $0xc8] sm:$0xff] }
 0x175   :  { %1744 = vmatpush.msrb.mxu1 %v704_v25  ;;  %v394_v21 = vsel %vm326_vm1, %v3059_v38, %v3093_v13  ;;  %v91_v25 = vld [vmem:[%s6288_s1 + $0x280] sm:$0xff] }
 0x176   :  { %2587 = vmatmul.msk.f32.gmra.mxu2 %vm799_vm2, %v4794_v50 }
 0x177   :  { %2599 = vmatmul.msk.f32.gmra.mxu3 %vm799_vm2, %v4794_v50  ;;  %1745 = vmatpush.msrb.mxu1 %v679_v36  ;;  %v3145_v36 = vpack.i.bf16 %v91_v25, %v4958_v44  ;;  %v3098_v25 = vunpack.i.l.bf16 %v4781_v39 }
 0x178   :  { %v1092_v61 = vpop.f32.mrf.mxu0 }
 0x179   :  { %v933_v63 = vpop.f32.mrf.mxu1  ;;  %v986_v60 = vpop.f32.mrf.mxu2  ;;  %2391 = vst [vmem:[%s6290_s2 + $0x728] sm:$0xff] %v1092_v61  ;;  %1746 = vmatpush.msrb.mxu1 %v654_v7  ;;  %3146 = vrot.lane.b32.xlu1 %v3145_v36, %s3253_s21  ;;  %v3175_v36 = vpack.i.bf16 %v4505_v4, %v4522_v47 }
 0x17a   :  { %2388 = vst [vmem:[%s6290_s2 + $0x710] sm:$0xff] %v933_v63  ;;  %v1039_v41 = vpop.f32.mrf.mxu3 }
 0x17b   :  { %2389 = vst [vmem:[%s6290_s2 + $0x718] sm:$0xff] %v986_v60  ;;  %2611 = vmatmul.msk.f32.gmra.mxu0 %vm799_vm2, %v4794_v50  ;;  %1747 = vmatpush.msrb.mxu1 %v394_v21  ;;  %v4993_v21 = vld [vmem:[%s6289_s0 + $0x30] sm:$0xff] }
 0x17c   :  { %2390 = vst [vmem:[%s6290_s2 + $0x720] sm:$0xff] %v1039_v41  ;;  %2575 = vmatmul.msk.f32.gmra.mxu1 %vm799_vm2, %v4794_v50  ;;  %v5018_v41 = vld [vmem:[%s6289_s0 + $0x38] sm:$0xff] }
 0x17d   :  { %1748 = vmatpush.msrb.mxu1 %v369_v54  ;;  %v3078_v54 = vunpack.i.l.bf16 %v4698_v22 }
 0x17e   :  { %2588 = vmatmul.msk.f32.gmra.mxu2 %vm799_vm2, %v4854_v37 }
 0x17f   :  { %2600 = vmatmul.msk.f32.gmra.mxu3 %vm799_vm2, %v4854_v37  ;;  %1749 = vmatpush.msrb.mxu1 %v344_v62 }
 0x180   :  { %v1095_v38 = vpop.f32.mrf.mxu0 }
 0x181   :  { %v936_v18 = vpop.f32.mrf.mxu1  ;;  %v989_v26 = vpop.f32.mrf.mxu2  ;;  %2416 = vst [vmem:[%s6290_s2 + $0x7f0] sm:$0xff] %v1095_v38  ;;  %1750 = vmatpush.msrb.mxu1 %v3209_v11  ;;  %v3073_v38 = vunpack.i.l.bf16 %v4710_v46  ;;  %v705_v11 = vsel %vm636_vm0, %v3068_v57, %v3069_v24  ;;  %v37_v57 = vld [vmem:[%s6288_s1 + $0xd0] sm:$0xff] }
 0x182   :  { %2413 = vst [vmem:[%s6290_s2 + $0x7d8] sm:$0xff] %v936_v18  ;;  %v1042_v1 = vpop.f32.mrf.mxu3 }
 0x183   :  { %2414 = vst [vmem:[%s6290_s2 + $0x7e0] sm:$0xff] %v989_v26  ;;  %2612 = vmatmul.msk.f32.gmra.mxu0 %vm799_vm2, %v4854_v37  ;;  %1751 = vmatpush.msrb.mxu1 %v3210_v43  ;;  %v680_v43 = vsel %vm636_vm0, %v3074_v49, %v3078_v54  ;;  %v706_v28 = vsel %vm636_vm0, %v3069_v24, %v3073_v38  ;;  %v64_v49 = vld [vmem:[%s6288_s1 + $0x1a8] sm:$0xff] }
 0x184   :  { %2415 = vst [vmem:[%s6290_s2 + $0x7e8] sm:$0xff] %v1042_v1  ;;  %2576 = vmatmul.msk.f32.gmra.mxu1 %vm799_vm2, %v4854_v37  ;;  %v3079_v1 = vunpack.i.h.bf16 %v4698_v22  ;;  %v3160_v22 = vpack.i.bf16 %v4724_v31, %v4500_v16  ;;  %1850 = vmatpush.msrb.mxu3 %v706_v28 }
 0x185   :  { %1752 = vmatpush.msrb.mxu1 %v4006_v40  ;;  %v3214_v40 = vld [vmem:[%s6288_s1 + $0x70] sm:$0xff] }
 0x186   :  { %2589 = vmatmul.msk.f32.gmra.mxu2 %vm799_vm2, %v4898_v23  ;;  %3161 = vrot.lane.b32.xlu1 %v3160_v22, %s3254_s24  ;;  %v681_v46 = vsel %vm636_vm0, %v3078_v54, %v3079_v1 }
 0x187   :  { %2601 = vmatmul.msk.f32.gmra.mxu3 %vm799_vm2, %v4898_v23  ;;  %1593 = vmatpush.msra.mxu2 %v3214_v40  ;;  %v3165_v40 = vpack.i.bf16 %v37_v57, %v64_v49 }
 0x188   :  { %v1098_v5 = vpop.f32.mrf.mxu0  ;;  %1851 = vmatpush.msrb.mxu3 %v681_v46 }
 0x189   :  { %v939_v33 = vpop.f32.mrf.mxu1  ;;  %v992_v27 = vpop.f32.mrf.mxu2  ;;  %2441 = vst [vmem:[%s6290_s2 + $0x8b8] sm:$0xff] %v1098_v5  ;;  %1797 = vmatpush.msrb.mxu2 %v705_v11  ;;  %v5061_v5 = vld [vmem:[%s6289_s0 + $0x40] sm:$0xff]  ;;  %3166 = vrot.lane.b32.xlu2 %v3165_v40, %s3253_s21 }
 0x18a   :  { %2438 = vst [vmem:[%s6290_s2 + $0x8a0] sm:$0xff] %v939_v33  ;;  %v1045_v8 = vpop.f32.mrf.mxu3  ;;  %v3084_v33 = vunpack.i.h.bf16 %v4688_v56 }
 0x18b   :  { %2439 = vst [vmem:[%s6290_s2 + $0x8a8] sm:$0xff] %v992_v27  ;;  %2613 = vmatmul.msk.f32.gmra.mxu0 %vm799_vm2, %v4898_v23  ;;  %1798 = vmatpush.msrb.mxu2 %v680_v43 }
 0x18c   :  { %2440 = vst [vmem:[%s6290_s2 + $0x8b0] sm:$0xff] %v1045_v8  ;;  %2577 = vmatmul.msk.f32.gmra.mxu1 %vm799_vm2, %v4898_v23 }
 0x18e   :  { %2590 = vmatmul.msk.f32.gmra.mxu2 %vm799_vm2, %v4933_v52  ;;  %v5050_v15 = vpop.permute.xlu2 %3106  ;;  %3176 = vrot.lane.b32.xlu1 %v3175_v36, %s3254_s24 }
 0x18f   :  { %2602 = vmatmul.msk.f32.gmra.mxu3 %vm799_vm2, %v4933_v52  ;;  %v3108_v2 = vunpack.i.l.bf16 %v5050_v15  ;;  %v3109_v8 = vunpack.i.h.bf16 %v5050_v15  ;;  %v3221_v15 = vld [vmem:[%s6288_s1 + $0x250] sm:$0xff] }
 0x190   :  { %v1277_v10 = vpop.f32.mrf.mxu0 }
 0x191   :  { %v1118_v42 = vpop.f32.mrf.mxu1  ;;  %v1171_v17 = vpop.f32.mrf.mxu2  ;;  %2169 = vst [vmem:[%s6290_s2 + $0x40] sm:$0xff] %v1277_v10  ;;  %v682_v31 = vsel %vm636_vm0, %v3079_v1, %v3108_v2 }
 0x192   :  { %2166 = vst [vmem:[%s6290_s2 + $0x28] sm:$0xff] %v1118_v42  ;;  %v1224_v51 = vpop.f32.mrf.mxu3 }
 0x193   :  { %2167 = vst [vmem:[%s6290_s2 + $0x30] sm:$0xff] %v1171_v17  ;;  %2614 = vmatmul.msk.f32.gmra.mxu0 %vm799_vm2, %v4933_v52 }
 0x194   :  { %2168 = vst [vmem:[%s6290_s2 + $0x38] sm:$0xff] %v1224_v51  ;;  %2578 = vmatmul.msk.f32.gmra.mxu1 %vm799_vm2, %v4933_v52  ;;  %v3094_v51 = vunpack.i.h.bf16 %v4763_v59 }
 0x196   :  { %2591 = vmatmul.msk.f32.gmra.mxu2 %vm799_vm2, %v4967_v6  ;;  %v395_v4 = vsel %vm326_vm1, %v3093_v13, %v3094_v51  ;;  %v396_v47 = vsel %vm326_vm1, %v3094_v51, %v3098_v25  ;;  %v5142_v13 = vpop.permute.xlu0 %3126 }
 0x197   :  { %2603 = vmatmul.msk.f32.gmra.mxu3 %vm799_vm2, %v4967_v6  ;;  %v3128_v39 = vunpack.i.l.bf16 %v5142_v13 }
 0x198   :  { %v1280_v19 = vpop.f32.mrf.mxu0 }
 0x199   :  { %v1121_v3 = vpop.f32.mrf.mxu1  ;;  %v1174_v7 = vpop.f32.mrf.mxu2  ;;  %2195 = vst [vmem:[%s6290_s2 + $0x108] sm:$0xff] %v1280_v19 }
 0x19a   :  { %2192 = vst [vmem:[%s6290_s2 + $0xf0] sm:$0xff] %v1121_v3  ;;  %v1227_v61 = vpop.f32.mrf.mxu3 }
 0x19b   :  { %2193 = vst [vmem:[%s6290_s2 + $0xf8] sm:$0xff] %v1174_v7  ;;  %2615 = vmatmul.msk.f32.gmra.mxu0 %vm799_vm2, %v4967_v6  ;;  %v655_v7 = vsel %vm636_vm0, %v3083_v58, %v3084_v33 }
 0x19c   :  { %2194 = vst [vmem:[%s6290_s2 + $0x100] sm:$0xff] %v1227_v61  ;;  %2579 = vmatmul.msk.f32.gmra.mxu1 %vm799_vm2, %v4967_v6  ;;  %1799 = vmatpush.msrb.mxu2 %v655_v7 }
 0x19e   :  { %2592 = vmatmul.msk.f32.gmra.mxu2 %vm799_vm2, %v4993_v21 }
 0x19f   :  { %2604 = vmatmul.msk.f32.gmra.mxu3 %vm799_vm2, %v4993_v21  ;;  %1800 = vmatpush.msrb.mxu2 %v395_v4 }
 0x1a0   :  { %v1283_v0 = vpop.f32.mrf.mxu0 }
 0x1a1   :  { %v1124_v63 = vpop.f32.mrf.mxu1  ;;  %v1177_v60 = vpop.f32.mrf.mxu2  ;;  %2220 = vst [vmem:[%s6290_s2 + $0x1d0] sm:$0xff] %v1283_v0 }
 0x1a2   :  { %2217 = vst [vmem:[%s6290_s2 + $0x1b8] sm:$0xff] %v1124_v63  ;;  %v1230_v14 = vpop.f32.mrf.mxu3  ;;  %v5026_v34 = vpop.permute.xlu1 %3086 }
 0x1a3   :  { %2218 = vst [vmem:[%s6290_s2 + $0x1c0] sm:$0xff] %v1177_v60  ;;  %2616 = vmatmul.msk.f32.gmra.mxu0 %vm799_vm2, %v4993_v21  ;;  %v3089_v26 = vunpack.i.h.bf16 %v5026_v34  ;;  %v3088_v32 = vunpack.i.l.bf16 %v5026_v34  ;;  %v5146_v60 = vpop.permute.xlu2 %3121 }
 0x1a4   :  { %2219 = vst [vmem:[%s6290_s2 + $0x1c8] sm:$0xff] %v1230_v14  ;;  %2580 = vmatmul.msk.f32.gmra.mxu1 %vm799_vm2, %v4993_v21  ;;  %v3123_v43 = vunpack.i.l.bf16 %v5146_v60 }
 0x1a5   :  { %v707_v16 = vsel %vm636_vm0, %v3073_v38, %v3089_v26  ;;  %v656_v19 = vsel %vm636_vm0, %v3084_v33, %v3088_v32  ;;  %v657_v3 = vsel %vm636_vm0, %v3088_v32, %v3109_v8  ;;  %v708_v51 = vsel %vm636_vm0, %v3089_v26, %v3128_v39 }
 0x1a6   :  { %2593 = vmatmul.msk.f32.gmra.mxu2 %vm799_vm2, %v5018_v41  ;;  %1903 = vmatpush.msrb.mxu0 %v707_v16 }
 0x1a7   :  { %2605 = vmatmul.msk.f32.gmra.mxu3 %vm799_vm2, %v5018_v41 }
 0x1a8   :  { %v1286_v30 = vpop.f32.mrf.mxu0  ;;  %1904 = vmatpush.msrb.mxu0 %v682_v31  ;;  %1852 = vmatpush.msrb.mxu3 %v656_v19 }
 0x1a9   :  { %v1127_v9 = vpop.f32.mrf.mxu1  ;;  %v1180_v62 = vpop.f32.mrf.mxu2  ;;  %2245 = vst [vmem:[%s6290_s2 + $0x298] sm:$0xff] %v1286_v30 }
 0x1aa   :  { %2242 = vst [vmem:[%s6290_s2 + $0x280] sm:$0xff] %v1127_v9  ;;  %v1233_v18 = vpop.f32.mrf.mxu3  ;;  %1905 = vmatpush.msrb.mxu0 %v657_v3  ;;  %v3102_v61 = vpop.permute.xlu1 %3101  ;;  %1853 = vmatpush.msrb.mxu3 %v396_v47 }
 0x1ab   :  { %2243 = vst [vmem:[%s6290_s2 + $0x288] sm:$0xff] %v1180_v62  ;;  %2617 = vmatmul.msk.f32.gmra.mxu0 %vm799_vm2, %v5018_v41  ;;  %v3104_v9 = vunpack.i.h.bf16 %v3102_v61  ;;  %v3103_v62 = vunpack.i.l.bf16 %v3102_v61  ;;  %v3220_v61 = vld [vmem:[%s6288_s1 + $0x248] sm:$0xff] }
 0x1ac   :  { %2244 = vst [vmem:[%s6290_s2 + $0x290] sm:$0xff] %v1233_v18  ;;  %2581 = vmatmul.msk.f32.gmra.mxu1 %vm799_vm2, %v5018_v41  ;;  %v5180_v16 = vpop.permute.xlu2 %3136 }
 0x1ad   :  { %v370_v31 = vsel %vm326_vm1, %v3099_v55, %v3103_v62  ;;  %v371_v57 = vsel %vm326_vm1, %v3103_v62, %v3104_v9  ;;  %v372_v33 = vsel %vm326_vm1, %v3104_v9, %v3123_v43  ;;  %v3114_v55 = vunpack.i.h.bf16 %v4837_v12  ;;  %v3225_v9 = vld [vmem:[%s6288_s1 + $0xa0] sm:$0xff] }
 0x1ae   :  { %2594 = vmatmul.msk.f32.gmra.mxu2 %vm799_vm2, %v5061_v5  ;;  %1854 = vmatpush.msrb.mxu3 %v371_v57 }
 0x1af   :  { %2606 = vmatmul.msk.f32.gmra.mxu3 %vm799_vm2, %v5061_v5  ;;  %1801 = vmatpush.msrb.mxu2 %v370_v31 }
 0x1b0   :  { %v1289_v27 = vpop.f32.mrf.mxu0 }
 0x1b1   :  { %v1130_v10 = vpop.f32.mrf.mxu1  ;;  %v1183_v42 = vpop.f32.mrf.mxu2  ;;  %2270 = vst [vmem:[%s6290_s2 + $0x360] sm:$0xff] %v1289_v27  ;;  %v3180_v27 = vpack.i.bf16 %v4958_v44, %v4729_v48 }
 0x1b2   :  { %2267 = vst [vmem:[%s6290_s2 + $0x348] sm:$0xff] %v1130_v10  ;;  %v1236_v17 = vpop.f32.mrf.mxu3  ;;  %v5159_v30 = vpop.permute.xlu1 %3116 }
 0x1b3   :  { %2268 = vst [vmem:[%s6290_s2 + $0x350] sm:$0xff] %v1183_v42  ;;  %2618 = vmatmul.msk.f32.gmra.mxu0 %vm799_vm2, %v5061_v5  ;;  %v3119_v18 = vunpack.i.h.bf16 %v5159_v30  ;;  %v3118_v32 = vunpack.i.l.bf16 %v5159_v30  ;;  %v3124_v42 = vunpack.i.h.bf16 %v5146_v60  ;;  %3181 = vrot.lane.b32.xlu2 %v3180_v27, %s3254_s24 }
 0x1b4   :  { %2269 = vst [vmem:[%s6290_s2 + $0x358] sm:$0xff] %v1236_v17  ;;  %2582 = vmatmul.msk.f32.gmra.mxu1 %vm799_vm2, %v5061_v5 }
 0x1b5   :  { %v397_v46 = vsel %vm326_vm1, %v3098_v25, %v3119_v18  ;;  %v346_v3 = vsel %vm326_vm1, %v3114_v55, %v3118_v32  ;;  %v347_v7 = vsel %vm326_vm1, %v3118_v32, %v3124_v42 }
 0x1b6   :  { %2595 = vmatmul.msk.f32.gmra.mxu2 %vm799_vm2, %v4608_v29  ;;  %1906 = vmatpush.msrb.mxu0 %v397_v46  ;;  %v3228_v46 = vld [vmem:[%s6288_s1 + $0x240] sm:$0xff] }
 0x1b7   :  { %2607 = vmatmul.msk.f32.gmra.mxu3 %vm799_vm2, %v4608_v29 }
 0x1b8   :  { %v1292_v56 = vpop.f32.mrf.mxu0  ;;  %1907 = vmatpush.msrb.mxu0 %v372_v33  ;;  %1855 = vmatpush.msrb.mxu3 %v346_v3  ;;  %v3230_v33 = vld [vmem:[%s6288_s1 + $0x168] sm:$0xff] }
 0x1b9   :  { %v1133_v58 = vpop.f32.mrf.mxu1  ;;  %v1186_v0 = vpop.f32.mrf.mxu2  ;;  %2295 = vst [vmem:[%s6290_s2 + $0x428] sm:$0xff] %v1292_v56 }
 0x1ba   :  { %2292 = vst [vmem:[%s6290_s2 + $0x410] sm:$0xff] %v1133_v58  ;;  %v1239_v59 = vpop.f32.mrf.mxu3  ;;  %v5171_v1 = vpop.permute.xlu0 %3141  ;;  %1908 = vmatpush.msrb.mxu0 %v347_v7  ;;  %1856 = vmatpush.msrb.mxu3 %v3220_v61 }
 0x1bb   :  { %2293 = vst [vmem:[%s6290_s2 + $0x418] sm:$0xff] %v1186_v0  ;;  %2619 = vmatmul.msk.f32.gmra.mxu0 %vm799_vm2, %v4608_v29  ;;  %v5199_v49 = vpop.permute.xlu1 %3131  ;;  %v3143_v25 = vunpack.i.l.bf16 %v5171_v1  ;;  %v5228_v36 = vpop.permute.xlu2 %3151 }
 0x1bc   :  { %2294 = vst [vmem:[%s6290_s2 + $0x420] sm:$0xff] %v1239_v59  ;;  %2583 = vmatmul.msk.f32.gmra.mxu1 %vm799_vm2, %v4608_v29  ;;  %v3134_v10 = vunpack.i.h.bf16 %v5199_v49  ;;  %v3153_v26 = vunpack.i.l.bf16 %v5228_v36  ;;  %1909 = vmatpush.msrb.mxu0 %v3221_v15  ;;  %v3222_v59 = vld [vmem:[%s6288_s1 + $0x170] sm:$0xff]  ;;  %v3133_v61 = vunpack.i.l.bf16 %v5199_v49  ;;  %v3138_v15 = vunpack.i.l.bf16 %v5180_v16 }
 0x1bd   :  { %1857 = vmatpush.msrb.mxu3 %v3222_v59  ;;  %v3144_v49 = vunpack.i.h.bf16 %v5171_v1 }
 0x1be   :  { %2596 = vmatmul.msk.f32.gmra.mxu2 %vm799_vm2, %v4641_v20  ;;  %v683_v34 = vsel %vm636_vm0, %v3108_v2, %v3134_v10  ;;  %v658_v2 = vsel %vm636_vm0, %v3109_v8, %v3143_v25  ;;  %v398_v56 = vsel %vm326_vm1, %v3119_v18, %v3153_v26 }
 0x1bf   :  { %2608 = vmatmul.msk.f32.gmra.mxu3 %vm799_vm2, %v4641_v20 }
 0x1c0   :  { %v1295_v63 = vpop.f32.mrf.mxu0 }
 0x1c1   :  { %v1136_v14 = vpop.f32.mrf.mxu1  ;;  %v1189_v24 = vpop.f32.mrf.mxu2  ;;  %2320 = vst [vmem:[%s6290_s2 + $0x4f0] sm:$0xff] %v1295_v63  ;;  %v3223_v63 = vld [vmem:[%s6288_s1 + $0x178] sm:$0xff] }
 0x1c2   :  { %2317 = vst [vmem:[%s6290_s2 + $0x4d8] sm:$0xff] %v1136_v14  ;;  %v1242_v54 = vpop.f32.mrf.mxu3  ;;  %v5246_v19 = vpop.permute.xlu0 %3156  ;;  %1910 = vmatpush.msrb.mxu0 %v3223_v63 }
 0x1c3   :  { %2318 = vst [vmem:[%s6290_s2 + $0x4e0] sm:$0xff] %v1189_v24  ;;  %2620 = vmatmul.msk.f32.gmra.mxu0 %vm799_vm2, %v4641_v20  ;;  %v3159_v47 = vunpack.i.h.bf16 %v5246_v19 }
 0x1c4   :  { %2319 = vst [vmem:[%s6290_s2 + $0x4e8] sm:$0xff] %v1242_v54  ;;  %2584 = vmatmul.msk.f32.gmra.mxu1 %vm799_vm2, %v4641_v20  ;;  %v3224_v54 = vld [vmem:[%s6288_s1 + $0x98] sm:$0xff]  ;;  %1911 = vmatpush.msrb.mxu0 %v3225_v9 }
 0x1c5   :  { %v373_v24 = vsel %vm326_vm1, %v3123_v43, %v3159_v47  ;;  %1858 = vmatpush.msrb.mxu3 %v3224_v54  ;;  %v345_v43 = vsel %vm326_vm1, %v3113_v45, %v3114_v55  ;;  %v3229_v45 = vld [vmem:[%s6288_s1 + $0xa8] sm:$0xff]  ;;  %v3231_v55 = vld [vmem:[%s6288_s1 + $0x90] sm:$0xff] }
 0x1c6   :  { %2597 = vmatmul.msk.f32.gmra.mxu2 %vm799_vm2, %v4676_v35 }
 0x1c7   :  { %2609 = vmatmul.msk.f32.gmra.mxu3 %vm799_vm2, %v4676_v35  ;;  %1802 = vmatpush.msrb.mxu2 %v345_v43 }
 0x1c8   :  { %v1298_v38 = vpop.f32.mrf.mxu0 }
 0x1c9   :  { %v1139_v11 = vpop.f32.mrf.mxu1  ;;  %v1192_v22 = vpop.f32.mrf.mxu2  ;;  %2345 = vst [vmem:[%s6290_s2 + $0x5b8] sm:$0xff] %v1298_v38  ;;  %1803 = vmatpush.msrb.mxu2 %v3228_v46 }
 0x1ca   :  { %2342 = vst [vmem:[%s6290_s2 + $0x5a0] sm:$0xff] %v1139_v11  ;;  %v1245_v28 = vpop.f32.mrf.mxu3  ;;  %v5293_v14 = vpop.permute.xlu0 %3171 }
 0x1cb   :  { %2343 = vst [vmem:[%s6290_s2 + $0x5a8] sm:$0xff] %v1192_v22  ;;  %2621 = vmatmul.msk.f32.gmra.mxu0 %vm799_vm2, %v4676_v35  ;;  %v3173_v30 = vunpack.i.l.bf16 %v5293_v14  ;;  %v3226_v22 = vld [vmem:[%s6288_s1 + $0x258] sm:$0xff]  ;;  %1804 = vmatpush.msrb.mxu2 %v3230_v33  ;;  %v659_v33 = vsel %vm636_vm0, %v3143_v25, %v3144_v49  ;;  %v5515_v25 = vld [vmem:[%s6289_s0 + $0x48] sm:$0xff] }
 0x1cc   :  { %2344 = vst [vmem:[%s6290_s2 + $0x5b0] sm:$0xff] %v1245_v28  ;;  %2585 = vmatmul.msk.f32.gmra.mxu1 %vm799_vm2, %v4676_v35  ;;  %v3227_v28 = vld [vmem:[%s6288_s1 + $0x180] sm:$0xff] }
 0x1cd   :  { %v348_v60 = vsel %vm326_vm1, %v3124_v42, %v3173_v30  ;;  %1805 = vmatpush.msrb.mxu2 %v3231_v55 }
 0x1ce   :  { %2634 = vmatmul.msk.f32.vlgmr.msra.gmra.mxu2 %vm799_vm2, %v4739_v53 }
 0x1cf   :  { %2646 = vmatmul.msk.f32.vlgmr.msra.gmra.mxu3 %vm799_vm2, %v4739_v53 }
 0x1d0   :  { %v1301_v40 = vpop.f32.mrf.mxu0 }
 0x1d1   :  { %v1142_v48 = vpop.f32.mrf.mxu1  ;;  %v1195_v44 = vpop.f32.mrf.mxu2  ;;  %2370 = vst [vmem:[%s6290_s2 + $0x680] sm:$0xff] %v1301_v40 }
 0x1d2   :  { %2367 = vst [vmem:[%s6290_s2 + $0x668] sm:$0xff] %v1142_v48  ;;  %v1248_v17 = vpop.f32.mrf.mxu3 }
 0x1d3   :  { %2368 = vst [vmem:[%s6290_s2 + $0x670] sm:$0xff] %v1195_v44  ;;  %2658 = vmatmul.msk.f32.vlgmr.msra.gmra.mxu0 %vm799_vm2, %v4739_v53 }
 0x1d4   :  { %2369 = vst [vmem:[%s6290_s2 + $0x678] sm:$0xff] %v1248_v17  ;;  %2622 = vmatmul.msk.f32.vlgmr.msra.gmra.mxu1 %vm799_vm2, %v4739_v53 }
 0x1d5   :  { %1956 = vmatpush.msra.mxu1 %v708_v51 }
 0x1d6   :  { %2635 = vmatmul.msk.f32.gmra.mxu2 %vm799_vm2, %v4794_v50 }
 0x1d7   :  { %2647 = vmatmul.msk.f32.gmra.mxu3 %vm799_vm2, %v4794_v50  ;;  %1957 = vmatpush.msra.mxu1 %v683_v34 }
 0x1d8   :  { %v1304_v4 = vpop.f32.mrf.mxu0 }
 0x1d9   :  { %v1145_v8 = vpop.f32.mrf.mxu1  ;;  %v1198_v58 = vpop.f32.mrf.mxu2  ;;  %2395 = vst [vmem:[%s6290_s2 + $0x748] sm:$0xff] %v1304_v4  ;;  %1958 = vmatpush.msra.mxu1 %v658_v2 }
 0x1da   :  { %2392 = vst [vmem:[%s6290_s2 + $0x730] sm:$0xff] %v1145_v8  ;;  %v1251_v0 = vpop.f32.mrf.mxu3 }
 0x1db   :  { %2393 = vst [vmem:[%s6290_s2 + $0x738] sm:$0xff] %v1198_v58  ;;  %2659 = vmatmul.msk.f32.gmra.mxu0 %vm799_vm2, %v4794_v50  ;;  %1959 = vmatpush.msra.mxu1 %v398_v56  ;;  %v3129_v56 = vunpack.i.h.bf16 %v5142_v13 }
 0x1dc   :  { %2394 = vst [vmem:[%s6290_s2 + $0x740] sm:$0xff] %v1251_v0  ;;  %2623 = vmatmul.msk.f32.gmra.mxu1 %vm799_vm2, %v4794_v50 }
 0x1dd   :  { %1960 = vmatpush.msra.mxu1 %v373_v24  ;;  %v3139_v24 = vunpack.i.h.bf16 %v5180_v16  ;;  %v709_v9 = vsel %vm636_vm0, %v3128_v39, %v3129_v56  ;;  %v684_v16 = vsel %vm636_vm0, %v3134_v10, %v3138_v15 }
 0x1de   :  { %2636 = vmatmul.msk.f32.gmra.mxu2 %vm799_vm2, %v4854_v37 }
 0x1df   :  { %2648 = vmatmul.msk.f32.gmra.mxu3 %vm799_vm2, %v4854_v37  ;;  %1961 = vmatpush.msra.mxu1 %v348_v60  ;;  %v710_v60 = vsel %vm636_vm0, %v3129_v56, %v3133_v61  ;;  %v685_v13 = vsel %vm636_vm0, %v3138_v15, %v3139_v24 }
 0x1e0   :  { %v1307_v62 = vpop.f32.mrf.mxu0  ;;  %2009 = vmatpush.msra.mxu2 %v709_v9  ;;  %2062 = vmatpush.msra.mxu3 %v710_v60 }
 0x1e1   :  { %v1148_v38 = vpop.f32.mrf.mxu1  ;;  %v1201_v18 = vpop.f32.mrf.mxu2  ;;  %2420 = vst [vmem:[%s6290_s2 + $0x810] sm:$0xff] %v1307_v62  ;;  %1962 = vmatpush.msra.mxu1 %v3226_v22 }
 0x1e2   :  { %2417 = vst [vmem:[%s6290_s2 + $0x7f8] sm:$0xff] %v1148_v38  ;;  %v1254_v11 = vpop.f32.mrf.mxu3  ;;  %2010 = vmatpush.msra.mxu2 %v684_v16  ;;  %2063 = vmatpush.msra.mxu3 %v685_v13 }
 0x1e3   :  { %2418 = vst [vmem:[%s6290_s2 + $0x800] sm:$0xff] %v1201_v18  ;;  %2660 = vmatmul.msk.f32.gmra.mxu0 %vm799_vm2, %v4854_v37  ;;  %1963 = vmatpush.msra.mxu1 %v3227_v28  ;;  %v3167_v62 = vpop.permute.xlu2 %3166 }
 0x1e4   :  { %2419 = vst [vmem:[%s6290_s2 + $0x808] sm:$0xff] %v1254_v11  ;;  %2624 = vmatmul.msk.f32.gmra.mxu1 %vm799_vm2, %v4854_v37  ;;  %v3168_v18 = vunpack.i.l.bf16 %v3167_v62  ;;  %v3169_v11 = vunpack.i.h.bf16 %v3167_v62  ;;  %2011 = vmatpush.msra.mxu2 %v659_v33 }
 0x1e5   :  { %1964 = vmatpush.msra.mxu1 %v3229_v45  ;;  %v3158_v45 = vunpack.i.l.bf16 %v5246_v19 }
 0x1e6   :  { %2637 = vmatmul.msk.f32.gmra.mxu2 %vm799_vm2, %v4898_v23  ;;  %v686_v22 = vsel %vm636_vm0, %v3139_v24, %v3168_v18 }
 0x1e7   :  { %2649 = vmatmul.msk.f32.gmra.mxu3 %vm799_vm2, %v4898_v23 }
 0x1e8   :  { %v1310_v12 = vpop.f32.mrf.mxu0 }
 0x1e9   :  { %v1151_v31 = vpop.f32.mrf.mxu1  ;;  %v1204_v57 = vpop.f32.mrf.mxu2  ;;  %2445 = vst [vmem:[%s6290_s2 + $0x8d8] sm:$0xff] %v1310_v12  ;;  %v3154_v12 = vunpack.i.h.bf16 %v5228_v36 }
 0x1ea   :  { %2442 = vst [vmem:[%s6290_s2 + $0x8c0] sm:$0xff] %v1151_v31  ;;  %v1257_v27 = vpop.f32.mrf.mxu3 }
 0x1eb   :  { %2443 = vst [vmem:[%s6290_s2 + $0x8c8] sm:$0xff] %v1204_v57  ;;  %2661 = vmatmul.msk.f32.gmra.mxu0 %vm799_vm2, %v4898_v23  ;;  %v3147_v63 = vpop.permute.xlu1 %3146  ;;  %v400_v55 = vsel %vm326_vm1, %v3154_v12, %v3158_v45 }
 0x1ec   :  { %2444 = vst [vmem:[%s6290_s2 + $0x8d0] sm:$0xff] %v1257_v27  ;;  %2625 = vmatmul.msk.f32.gmra.mxu1 %vm799_vm2, %v4898_v23  ;;  %v3149_v54 = vunpack.i.h.bf16 %v3147_v63  ;;  %v3148_v10 = vunpack.i.l.bf16 %v3147_v63  ;;  %v399_v27 = vsel %vm326_vm1, %v3153_v26, %v3154_v12  ;;  %v3174_v63 = vunpack.i.h.bf16 %v5293_v14 }
 0x1ed   :  { %2012 = vmatpush.msra.mxu2 %v399_v27 }
 0x1ee   :  { %2638 = vmatmul.msk.f32.gmra.mxu2 %vm799_vm2, %v4933_v52  ;;  %v711_v38 = vsel %vm636_vm0, %v3133_v61, %v3149_v54  ;;  %v660_v31 = vsel %vm636_vm0, %v3144_v49, %v3148_v10  ;;  %v661_v57 = vsel %vm636_vm0, %v3148_v10, %v3169_v11  ;;  %v3238_v11 = vld [vmem:[%s6288_s1 + $0x190] sm:$0xff] }
 0x1ef   :  { %2650 = vmatmul.msk.f32.gmra.mxu3 %vm799_vm2, %v4933_v52  ;;  %2115 = vmatpush.msra.mxu0 %v711_v38  ;;  %v3235_v38 = vld [vmem:[%s6288_s1 + $0x270] sm:$0xff] }
 0x1f0   :  { %v1489_v32 = vpop.f32.mrf.mxu0  ;;  %2064 = vmatpush.msra.mxu3 %v660_v31  ;;  %v3241_v31 = vld [vmem:[%s6288_s1 + $0x260] sm:$0xff] }
 0x1f1   :  { %v1330_v40 = vpop.f32.mrf.mxu1  ;;  %v1383_v42 = vpop.f32.mrf.mxu2  ;;  %2173 = vst [vmem:[%s6290_s2 + $0x60] sm:$0xff] %v1489_v32  ;;  %2116 = vmatpush.msra.mxu0 %v686_v22  ;;  %v3239_v22 = vld [vmem:[%s6288_s1 + $0xb8] sm:$0xff] }
 0x1f2   :  { %2170 = vst [vmem:[%s6290_s2 + $0x48] sm:$0xff] %v1330_v40  ;;  %v1436_v48 = vpop.f32.mrf.mxu3  ;;  %2065 = vmatpush.msra.mxu3 %v400_v55 }
 0x1f3   :  { %2171 = vst [vmem:[%s6290_s2 + $0x50] sm:$0xff] %v1383_v42  ;;  %2662 = vmatmul.msk.f32.gmra.mxu0 %vm799_vm2, %v4933_v52 }
 0x1f4   :  { %2172 = vst [vmem:[%s6290_s2 + $0x58] sm:$0xff] %v1436_v48  ;;  %2626 = vmatmul.msk.f32.gmra.mxu1 %vm799_vm2, %v4933_v52  ;;  %2117 = vmatpush.msra.mxu0 %v661_v57 }
 0x1f6   :  { %2639 = vmatmul.msk.f32.gmra.mxu2 %vm799_vm2, %v4967_v6 }
 0x1f7   :  { %2651 = vmatmul.msk.f32.gmra.mxu3 %vm799_vm2, %v4967_v6 }
 0x1f8   :  { %v1492_v44 = vpop.f32.mrf.mxu0  ;;  %v3162_v26 = vpop.permute.xlu1 %3161 }
 0x1f9   :  { %v1333_v17 = vpop.f32.mrf.mxu1  ;;  %v1386_v51 = vpop.f32.mrf.mxu2  ;;  %2199 = vst [vmem:[%s6290_s2 + $0x128] sm:$0xff] %v1492_v44 }
 0x1fa   :  { %2196 = vst [vmem:[%s6290_s2 + $0x110] sm:$0xff] %v1333_v17  ;;  %v1439_v34 = vpop.f32.mrf.mxu3 }
 0x1fb   :  { %2197 = vst [vmem:[%s6290_s2 + $0x118] sm:$0xff] %v1386_v51  ;;  %2663 = vmatmul.msk.f32.gmra.mxu0 %vm799_vm2, %v4967_v6  ;;  %v3164_v51 = vunpack.i.h.bf16 %v3162_v26 }
 0x1fc   :  { %2198 = vst [vmem:[%s6290_s2 + $0x120] sm:$0xff] %v1439_v34  ;;  %2627 = vmatmul.msk.f32.gmra.mxu1 %vm799_vm2, %v4967_v6  ;;  %v3163_v34 = vunpack.i.l.bf16 %v3162_v26 }
 0x1fe   :  { %2640 = vmatmul.msk.f32.gmra.mxu2 %vm799_vm2, %v4993_v21 }
 0x1ff   :  { %2652 = vmatmul.msk.f32.gmra.mxu3 %vm799_vm2, %v4993_v21 }
 0x200   :  { %v1495_v3 = vpop.f32.mrf.mxu0 }
 0x201   :  { %v1336_v7 = vpop.f32.mrf.mxu1  ;;  %v1389_v2 = vpop.f32.mrf.mxu2  ;;  %2224 = vst [vmem:[%s6290_s2 + $0x1f0] sm:$0xff] %v1495_v3 }
 0x202   :  { %2221 = vst [vmem:[%s6290_s2 + $0x1d8] sm:$0xff] %v1336_v7  ;;  %v1442_v4 = vpop.f32.mrf.mxu3  ;;  %v3177_v3 = vpop.permute.xlu1 %3176 }
 0x203   :  { %2222 = vst [vmem:[%s6290_s2 + $0x1e0] sm:$0xff] %v1389_v2  ;;  %2664 = vmatmul.msk.f32.gmra.mxu0 %vm799_vm2, %v4993_v21  ;;  %v3178_v19 = vunpack.i.l.bf16 %v3177_v3 }
 0x204   :  { %2223 = vst [vmem:[%s6290_s2 + $0x1e8] sm:$0xff] %v1442_v4  ;;  %2628 = vmatmul.msk.f32.gmra.mxu1 %vm799_vm2, %v4993_v21  ;;  %v3179_v4 = vunpack.i.h.bf16 %v3177_v3 }
 0x205   :  { %v350_v60 = vsel %vm326_vm1, %v3174_v63, %v3178_v19 }
 0x206   :  { %2641 = vmatmul.msk.f32.gmra.mxu2 %vm799_vm2, %v5018_v41 }
 0x207   :  { %2653 = vmatmul.msk.f32.gmra.mxu3 %vm799_vm2, %v5018_v41 }
 0x208   :  { %v1498_v8 = vpop.f32.mrf.mxu0 }
 0x209   :  { %v1339_v58 = vpop.f32.mrf.mxu1  ;;  %v1392_v0 = vpop.f32.mrf.mxu2  ;;  %2249 = vst [vmem:[%s6290_s2 + $0x2b8] sm:$0xff] %v1498_v8  ;;  %v401_v8 = vsel %vm326_vm1, %v3158_v45, %v3179_v4  ;;  %v349_v45 = vsel %vm326_vm1, %v3173_v30, %v3174_v63  ;;  %v3243_v30 = vld [vmem:[%s6288_s1 + $0xb0] sm:$0xff] }
 0x20a   :  { %2246 = vst [vmem:[%s6290_s2 + $0x2a0] sm:$0xff] %v1339_v58  ;;  %v1445_v59 = vpop.f32.mrf.mxu3  ;;  %v374_v58 = vsel %vm326_vm1, %v3159_v47, %v3163_v34  ;;  %2118 = vmatpush.msra.mxu0 %v401_v8 }
 0x20b   :  { %2247 = vst [vmem:[%s6290_s2 + $0x2a8] sm:$0xff] %v1392_v0  ;;  %2665 = vmatmul.msk.f32.gmra.mxu0 %vm799_vm2, %v5018_v41  ;;  %v375_v0 = vsel %vm326_vm1, %v3163_v34, %v3164_v51  ;;  %2013 = vmatpush.msra.mxu2 %v374_v58 }
 0x20c   :  { %2248 = vst [vmem:[%s6290_s2 + $0x2b0] sm:$0xff] %v1445_v59  ;;  %2629 = vmatmul.msk.f32.gmra.mxu1 %vm799_vm2, %v5018_v41  ;;  %2066 = vmatpush.msra.mxu3 %v375_v0 }
 0x20d   :  { %v3182_v61 = vpop.permute.xlu2 %3181  ;;  %2014 = vmatpush.msra.mxu2 %v349_v45 }
 0x20e   :  { %2642 = vmatmul.msk.f32.gmra.mxu2 %vm799_vm2, %v5061_v5  ;;  %v3183_v15 = vunpack.i.l.bf16 %v3182_v61  ;;  %v3184_v54 = vunpack.i.h.bf16 %v3182_v61  ;;  %2067 = vmatpush.msra.mxu3 %v350_v60  ;;  %v3245_v60 = vld [vmem:[%s6289_s0 + $0x8] sm:$0xff] }
 0x20f   :  { %2654 = vmatmul.msk.f32.gmra.mxu3 %vm799_vm2, %v5061_v5  ;;  %2015 = vmatpush.msra.mxu2 %v3241_v31 }
 0x210   :  { %v1501_v39 = vpop.f32.mrf.mxu0  ;;  %v376_v59 = vsel %vm326_vm1, %v3164_v51, %v3183_v15  ;;  %v351_v62 = vsel %vm326_vm1, %v3178_v19, %v3184_v54  ;;  %v3244_v19 = vld [vmem:[%s6289_s0] sm:$0xff] }
 0x211   :  { %v1342_v43 = vpop.f32.mrf.mxu1  ;;  %v1395_v28 = vpop.f32.mrf.mxu2  ;;  %2274 = vst [vmem:[%s6290_s2 + $0x380] sm:$0xff] %v1501_v39  ;;  %2119 = vmatpush.msra.mxu0 %v376_v59  ;;  %v3237_v39 = vld [vmem:[%s6288_s1 + $0x198] sm:$0xff] }
 0x212   :  { %2271 = vst [vmem:[%s6290_s2 + $0x368] sm:$0xff] %v1342_v43  ;;  %v1448_v46 = vpop.f32.mrf.mxu3  ;;  %v3240_v43 = vld [vmem:[%s6288_s1 + $0xc0] sm:$0xff] }
 0x213   :  { %2272 = vst [vmem:[%s6290_s2 + $0x370] sm:$0xff] %v1395_v28  ;;  %2666 = vmatmul.msk.f32.gmra.mxu0 %vm799_vm2, %v5061_v5 }
 0x214   :  { %2273 = vst [vmem:[%s6290_s2 + $0x378] sm:$0xff] %v1448_v46  ;;  %2630 = vmatmul.msk.f32.gmra.mxu1 %vm799_vm2, %v5061_v5  ;;  %2120 = vmatpush.msra.mxu0 %v351_v62 }
 0x216   :  { %2643 = vmatmul.msk.f32.gmra.mxu2 %vm799_vm2, %v4608_v29  ;;  %2121 = vmatpush.msra.mxu0 %v3235_v38 }
 0x217   :  { %2655 = vmatmul.msk.f32.gmra.mxu3 %vm799_vm2, %v4608_v29 }
 0x218   :  { %v1504_v32 = vpop.f32.mrf.mxu0  ;;  %2122 = vmatpush.msra.mxu0 %v3237_v39 }
 0x219   :  { %v1345_v1 = vpop.f32.mrf.mxu1  ;;  %v1398_v40 = vpop.f32.mrf.mxu2  ;;  %2299 = vst [vmem:[%s6290_s2 + $0x448] sm:$0xff] %v1504_v32 }
 0x21a   :  { %2296 = vst [vmem:[%s6290_s2 + $0x430] sm:$0xff] %v1345_v1  ;;  %v1451_v29 = vpop.f32.mrf.mxu3  ;;  %2123 = vmatpush.msra.mxu0 %v3240_v43 }
 0x21b   :  { %2297 = vst [vmem:[%s6290_s2 + $0x438] sm:$0xff] %v1398_v40  ;;  %2667 = vmatmul.msk.f32.gmra.mxu0 %vm799_vm2, %v5515_v25 }
 0x21c   :  { %2298 = vst [vmem:[%s6290_s2 + $0x440] sm:$0xff] %v1451_v29  ;;  %2631 = vmatmul.msk.f32.gmra.mxu1 %vm799_vm2, %v5515_v25 }
 0x21e   :  { %2644 = vmatmul.msk.f32.gmra.mxu2 %vm799_vm2, %v4641_v20 }
 0x21f   :  { %2656 = vmatmul.msk.f32.gmra.mxu3 %vm799_vm2, %v4641_v20  ;;  %v5540_v20 = vld [vmem:[%s6289_s0 + $0x50] sm:$0xff] }
 0x220   :  { %v1507_v36 = vpop.f32.mrf.mxu0 }
 0x221   :  { %v1348_v42 = vpop.f32.mrf.mxu1  ;;  %v1401_v48 = vpop.f32.mrf.mxu2  ;;  %2324 = vst [vmem:[%s6290_s2 + $0x510] sm:$0xff] %v1507_v36 }
 0x222   :  { %2321 = vst [vmem:[%s6290_s2 + $0x4f8] sm:$0xff] %v1348_v42  ;;  %v1454_v44 = vpop.f32.mrf.mxu3 }
 0x223   :  { %2322 = vst [vmem:[%s6290_s2 + $0x500] sm:$0xff] %v1401_v48  ;;  %2668 = vmatmul.msk.f32.gmra.mxu0 %vm799_vm2, %v5540_v20 }
 0x224   :  { %2323 = vst [vmem:[%s6290_s2 + $0x508] sm:$0xff] %v1454_v44  ;;  %2632 = vmatmul.msk.f32.gmra.mxu1 %vm799_vm2, %v5540_v20 }
 0x226   :  { %2645 = vmatmul.msk.f32.gmra.mxu2 %vm799_vm2, %v4676_v35 }
 0x227   :  { %2657 = vmatmul.msk.f32.gmra.mxu3 %vm799_vm2, %v4676_v35  ;;  %v5565_v35 = vld [vmem:[%s6289_s0 + $0x58] sm:$0xff] }
 0x228   :  { %v1510_v17 = vpop.f32.mrf.mxu0 }
 0x229   :  { %v1351_v7 = vpop.f32.mrf.mxu1  ;;  %v1404_v2 = vpop.f32.mrf.mxu2  ;;  %2349 = vst [vmem:[%s6290_s2 + $0x5d8] sm:$0xff] %v1510_v17 }
 0x22a   :  { %2346 = vst [vmem:[%s6290_s2 + $0x5c0] sm:$0xff] %v1351_v7  ;;  %v1457_v56 = vpop.f32.mrf.mxu3 }
 0x22b   :  { %2347 = vst [vmem:[%s6290_s2 + $0x5c8] sm:$0xff] %v1404_v2  ;;  %2669 = vmatmul.msk.f32.gmra.mxu0 %vm799_vm2, %v5565_v35 }
 0x22c   :  { %2348 = vst [vmem:[%s6290_s2 + $0x5d0] sm:$0xff] %v1457_v56  ;;  %2633 = vmatmul.msk.f32.gmra.mxu1 %vm799_vm2, %v5565_v35 }
 0x22e   :  { %2682 = vmatmul.msk.f32.vlgmr.msrb.gmra.mxu2 %vm799_vm2, %v4739_v53 }
 0x22f   :  { %2694 = vmatmul.msk.f32.vlgmr.msrb.gmra.mxu3 %vm799_vm2, %v4739_v53 }
 0x230   :  { %v1513_v24 = vpop.f32.mrf.mxu0 }
 0x231   :  { %v1354_v47 = vpop.f32.mrf.mxu1  ;;  %v1407_v9 = vpop.f32.mrf.mxu2  ;;  %2374 = vst [vmem:[%s6290_s2 + $0x6a0] sm:$0xff] %v1513_v24 }
 0x232   :  { %2371 = vst [vmem:[%s6290_s2 + $0x688] sm:$0xff] %v1354_v47  ;;  %v1460_v16 = vpop.f32.mrf.mxu3 }
 0x233   :  { %2372 = vst [vmem:[%s6290_s2 + $0x690] sm:$0xff] %v1407_v9  ;;  %2706 = vmatmul.msk.f32.vlgmr.msrb.gmra.mxu0 %vm799_vm2, %v4739_v53 }
 0x234   :  { %2373 = vst [vmem:[%s6290_s2 + $0x698] sm:$0xff] %v1460_v16  ;;  %2670 = vmatmul.msk.f32.vlgmr.msrb.gmra.mxu1 %vm799_vm2, %v4739_v53  ;;  %v3236_v53 = vld [vmem:[%s6288_s1 + $0x268] sm:$0xff] }
 0x235   :  { %2068 = vmatpush.msra.mxu3 %v3236_v53 }
 0x236   :  { %2683 = vmatmul.msk.f32.gmra.mxu2 %vm799_vm2, %v4794_v50 }
 0x237   :  { %2695 = vmatmul.msk.f32.gmra.mxu3 %vm799_vm2, %v4794_v50 }
 0x238   :  { %v1516_v18 = vpop.f32.mrf.mxu0  ;;  %2069 = vmatpush.msra.mxu3 %v3238_v11 }
 0x239   :  { %v1357_v13 = vpop.f32.mrf.mxu1  ;;  %v1410_v49 = vpop.f32.mrf.mxu2  ;;  %2399 = vst [vmem:[%s6290_s2 + $0x768] sm:$0xff] %v1516_v18 }
 0x23a   :  { %2396 = vst [vmem:[%s6290_s2 + $0x750] sm:$0xff] %v1357_v13  ;;  %v1463_v10 = vpop.f32.mrf.mxu3  ;;  %2070 = vmatpush.msra.mxu3 %v3239_v22  ;;  %v3246_v13 = vld [vmem:[%s6289_s0 + $0x10] sm:$0xff]  ;;  %v3247_v22 = vld [vmem:[%s6289_s0 + $0x18] sm:$0xff] }
 0x23b   :  { %2397 = vst [vmem:[%s6290_s2 + $0x758] sm:$0xff] %v1410_v49  ;;  %2707 = vmatmul.msk.f32.gmra.mxu0 %vm799_vm2, %v4794_v50 }
 0x23c   :  { %2398 = vst [vmem:[%s6290_s2 + $0x760] sm:$0xff] %v1463_v10  ;;  %2671 = vmatmul.msk.f32.gmra.mxu1 %vm799_vm2, %v4794_v50 }
 0x23e   :  { %2684 = vmatmul.msk.f32.gmra.mxu2 %vm799_vm2, %v4854_v37 }
 0x23f   :  { %2696 = vmatmul.msk.f32.gmra.mxu3 %vm799_vm2, %v4854_v37 }
 0x240   :  { %v1519_v28 = vpop.f32.mrf.mxu0 }
 0x241   :  { %v1360_v46 = vpop.f32.mrf.mxu1  ;;  %v1413_v12 = vpop.f32.mrf.mxu2  ;;  %2424 = vst [vmem:[%s6290_s2 + $0x830] sm:$0xff] %v1519_v28 }
 0x242   :  { %2421 = vst [vmem:[%s6290_s2 + $0x818] sm:$0xff] %v1360_v46  ;;  %v1466_v50 = vpop.f32.mrf.mxu3 }
 0x243   :  { %2422 = vst [vmem:[%s6290_s2 + $0x820] sm:$0xff] %v1413_v12  ;;  %2708 = vmatmul.msk.f32.gmra.mxu0 %vm799_vm2, %v4854_v37 }
 0x244   :  { %2423 = vst [vmem:[%s6290_s2 + $0x828] sm:$0xff] %v1466_v50  ;;  %2672 = vmatmul.msk.f32.gmra.mxu1 %vm799_vm2, %v4854_v37  ;;  %v3242_v37 = vld [vmem:[%s6288_s1 + $0x188] sm:$0xff]  ;;  %v3248_v50 = vld [vmem:[%s6289_s0 + $0x20] sm:$0xff] }
 0x245   :  { %2016 = vmatpush.msra.mxu2 %v3242_v37 }
 0x246   :  { %2685 = vmatmul.msk.f32.gmra.mxu2 %vm799_vm2, %v4898_v23 }
 0x247   :  { %2697 = vmatmul.msk.f32.gmra.mxu3 %vm799_vm2, %v4898_v23  ;;  %2017 = vmatpush.msra.mxu2 %v3243_v30 }
 0x248   :  { %v1522_v57 = vpop.f32.mrf.mxu0 }
 0x249   :  { %v1363_v33 = vpop.f32.mrf.mxu1  ;;  %v1416_v27 = vpop.f32.mrf.mxu2  ;;  %2449 = vst [vmem:[%s6290_s2 + $0x8f8] sm:$0xff] %v1522_v57 }
 0x24a   :  { %2446 = vst [vmem:[%s6290_s2 + $0x8e0] sm:$0xff] %v1363_v33  ;;  %v1469_v14 = vpop.f32.mrf.mxu3 }
 0x24b   :  { %2447 = vst [vmem:[%s6290_s2 + $0x8e8] sm:$0xff] %v1416_v27  ;;  %2709 = vmatmul.msk.f32.gmra.mxu0 %vm799_vm2, %v4898_v23  ;;  %v3249_v27 = vld [vmem:[%s6289_s0 + $0x28] sm:$0xff] }
 0x24c   :  { %2448 = vst [vmem:[%s6290_s2 + $0x8f0] sm:$0xff] %v1469_v14  ;;  %2673 = vmatmul.msk.f32.gmra.mxu1 %vm799_vm2, %v4898_v23 }
 0x24e   :  { %2686 = vmatmul.msk.f32.gmra.mxu2 %vm799_vm2, %v4933_v52 }
 0x24f   :  { %2698 = vmatmul.msk.f32.gmra.mxu3 %vm799_vm2, %v4933_v52 }
 0x250   :  { %v1701_v55 = vpop.f32.mrf.mxu0 }
 0x251   :  { %v1542_v32 = vpop.f32.mrf.mxu1  ;;  %v1595_v1 = vpop.f32.mrf.mxu2  ;;  %2177 = vst [vmem:[%s6290_s2 + $0x80] sm:$0xff] %v1701_v55 }
 0x252   :  { %2174 = vst [vmem:[%s6290_s2 + $0x68] sm:$0xff] %v1542_v32  ;;  %v1648_v40 = vpop.f32.mrf.mxu3  ;;  %v3250_v32 = vld [vmem:[%s6289_s0 + $0x30] sm:$0xff] }
 0x253   :  { %2175 = vst [vmem:[%s6290_s2 + $0x70] sm:$0xff] %v1595_v1  ;;  %2710 = vmatmul.msk.f32.gmra.mxu0 %vm799_vm2, %v4933_v52 }
 0x254   :  { %2176 = vst [vmem:[%s6290_s2 + $0x78] sm:$0xff] %v1648_v40  ;;  %2674 = vmatmul.msk.f32.gmra.mxu1 %vm799_vm2, %v4933_v52 }
 0x256   :  { %2687 = vmatmul.msk.f32.gmra.mxu2 %vm799_vm2, %v4967_v6 }
 0x257   :  { %2699 = vmatmul.msk.f32.gmra.mxu3 %vm799_vm2, %v4967_v6 }
 0x258   :  { %v1704_v23 = vpop.f32.mrf.mxu0 }
 0x259   :  { %v1545_v29 = vpop.f32.mrf.mxu1  ;;  %v1598_v36 = vpop.f32.mrf.mxu2  ;;  %2203 = vst [vmem:[%s6290_s2 + $0x148] sm:$0xff] %v1704_v23 }
 0x25a   :  { %2200 = vst [vmem:[%s6290_s2 + $0x130] sm:$0xff] %v1545_v29  ;;  %v1651_v26 = vpop.f32.mrf.mxu3 }
 0x25b   :  { %2201 = vst [vmem:[%s6290_s2 + $0x138] sm:$0xff] %v1598_v36  ;;  %2711 = vmatmul.msk.f32.gmra.mxu0 %vm799_vm2, %v4967_v6  ;;  %v3251_v36 = vld [vmem:[%s6289_s0 + $0x38] sm:$0xff] }
 0x25c   :  { %2202 = vst [vmem:[%s6290_s2 + $0x140] sm:$0xff] %v1651_v26  ;;  %2675 = vmatmul.msk.f32.gmra.mxu1 %vm799_vm2, %v4967_v6 }
 0x25e   :  { %2688 = vmatmul.msk.f32.gmra.mxu2 %vm799_vm2, %v4993_v21 }
 0x25f   :  { %2700 = vmatmul.msk.f32.gmra.mxu3 %vm799_vm2, %v4993_v21 }
 0x260   :  { %v1707_v52 = vpop.f32.mrf.mxu0 }
 0x261   :  { %v1548_v42 = vpop.f32.mrf.mxu1  ;;  %v1601_v48 = vpop.f32.mrf.mxu2  ;;  %2228 = vst [vmem:[%s6290_s2 + $0x210] sm:$0xff] %v1707_v52 }
 0x262   :  { %2225 = vst [vmem:[%s6290_s2 + $0x1f8] sm:$0xff] %v1548_v42  ;;  %v1654_v44 = vpop.f32.mrf.mxu3 }
 0x263   :  { %2226 = vst [vmem:[%s6290_s2 + $0x200] sm:$0xff] %v1601_v48  ;;  %2712 = vmatmul.msk.f32.gmra.mxu0 %vm799_vm2, %v4993_v21 }
 0x264   :  { %2227 = vst [vmem:[%s6290_s2 + $0x208] sm:$0xff] %v1654_v44  ;;  %2676 = vmatmul.msk.f32.gmra.mxu1 %vm799_vm2, %v4993_v21  ;;  %v3252_v44 = vld [vmem:[%s6289_s0 + $0x40] sm:$0xff] }
 0x266   :  { %2689 = vmatmul.msk.f32.gmra.mxu2 %vm799_vm2, %v5018_v41 }
 0x267   :  { %2701 = vmatmul.msk.f32.gmra.mxu3 %vm799_vm2, %v5018_v41 }
 0x268   :  { %v1710_v6 = vpop.f32.mrf.mxu0 }
 0x269   :  { %v1551_v17 = vpop.f32.mrf.mxu1  ;;  %v1604_v51 = vpop.f32.mrf.mxu2  ;;  %2253 = vst [vmem:[%s6290_s2 + $0x2d8] sm:$0xff] %v1710_v6 }
 0x26a   :  { %2250 = vst [vmem:[%s6290_s2 + $0x2c0] sm:$0xff] %v1551_v17  ;;  %v1657_v34 = vpop.f32.mrf.mxu3 }
 0x26b   :  { %2251 = vst [vmem:[%s6290_s2 + $0x2c8] sm:$0xff] %v1604_v51  ;;  %2713 = vmatmul.msk.f32.gmra.mxu0 %vm799_vm2, %v5018_v41 }
 0x26c   :  { %2252 = vst [vmem:[%s6290_s2 + $0x2d0] sm:$0xff] %v1657_v34  ;;  %2677 = vmatmul.msk.f32.gmra.mxu1 %vm799_vm2, %v5018_v41 }
 0x26e   :  { %2690 = vmatmul.msk.f32.gmra.mxu2 %vm799_vm2, %v5061_v5 }
 0x26f   :  { %2702 = vmatmul.msk.f32.gmra.mxu3 %vm799_vm2, %v5061_v5 }
 0x270   :  { %v1713_v21 = vpop.f32.mrf.mxu0 }
 0x271   :  { %v1554_v3 = vpop.f32.mrf.mxu1  ;;  %v1607_v7 = vpop.f32.mrf.mxu2  ;;  %2278 = vst [vmem:[%s6290_s2 + $0x3a0] sm:$0xff] %v1713_v21 }
 0x272   :  { %2275 = vst [vmem:[%s6290_s2 + $0x388] sm:$0xff] %v1554_v3  ;;  %v1660_v2 = vpop.f32.mrf.mxu3 }
 0x273   :  { %2276 = vst [vmem:[%s6290_s2 + $0x390] sm:$0xff] %v1607_v7  ;;  %2714 = vmatmul.msk.f32.gmra.mxu0 %vm799_vm2, %v5061_v5 }
 0x274   :  { %2277 = vst [vmem:[%s6290_s2 + $0x398] sm:$0xff] %v1660_v2  ;;  %2678 = vmatmul.msk.f32.gmra.mxu1 %vm799_vm2, %v5061_v5 }
 0x276   :  { %2691 = vmatmul.msk.f32.gmra.mxu2 %vm799_vm2, %v5515_v25 }
 0x277   :  { %2703 = vmatmul.msk.f32.gmra.mxu3 %vm799_vm2, %v5515_v25 }
 0x278   :  { %v1716_v41 = vpop.f32.mrf.mxu0 }
 0x279   :  { %v1557_v4 = vpop.f32.mrf.mxu1  ;;  %v1610_v56 = vpop.f32.mrf.mxu2  ;;  %2303 = vst [vmem:[%s6290_s2 + $0x468] sm:$0xff] %v1716_v41 }
 0x27a   :  { %2300 = vst [vmem:[%s6290_s2 + $0x450] sm:$0xff] %v1557_v4  ;;  %v1663_v61 = vpop.f32.mrf.mxu3 }
 0x27b   :  { %2301 = vst [vmem:[%s6290_s2 + $0x458] sm:$0xff] %v1610_v56  ;;  %2715 = vmatmul.msk.f32.gmra.mxu0 %vm799_vm2, %v5515_v25 }
 0x27c   :  { %2302 = vst [vmem:[%s6290_s2 + $0x460] sm:$0xff] %v1663_v61  ;;  %2679 = vmatmul.msk.f32.gmra.mxu1 %vm799_vm2, %v5515_v25 }
 0x27e   :  { %2692 = vmatmul.msk.f32.gmra.mxu2 %vm799_vm2, %v5540_v20 }
 0x27f   :  { %2704 = vmatmul.msk.f32.gmra.mxu3 %vm799_vm2, %v5540_v20 }
 0x280   :  { %v1719_v5 = vpop.f32.mrf.mxu0 }
 0x281   :  { %v1560_v15 = vpop.f32.mrf.mxu1  ;;  %v1613_v8 = vpop.f32.mrf.mxu2  ;;  %2328 = vst [vmem:[%s6290_s2 + $0x530] sm:$0xff] %v1719_v5 }
 0x282   :  { %2325 = vst [vmem:[%s6290_s2 + $0x518] sm:$0xff] %v1560_v15  ;;  %v1666_v58 = vpop.f32.mrf.mxu3 }
 0x283   :  { %2326 = vst [vmem:[%s6290_s2 + $0x520] sm:$0xff] %v1613_v8  ;;  %2716 = vmatmul.msk.f32.gmra.mxu0 %vm799_vm2, %v5540_v20 }
 0x284   :  { %2327 = vst [vmem:[%s6290_s2 + $0x528] sm:$0xff] %v1666_v58  ;;  %2680 = vmatmul.msk.f32.gmra.mxu1 %vm799_vm2, %v5540_v20 }
 0x286   :  { %2693 = vmatmul.msk.f32.gmra.mxu2 %vm799_vm2, %v5565_v35 }
 0x287   :  { %2705 = vmatmul.msk.f32.gmra.mxu3 %vm799_vm2, %v5565_v35 }
 0x288   :  { %v1722_v0 = vpop.f32.mrf.mxu0 }
 0x289   :  { %v1563_v59 = vpop.f32.mrf.mxu1  ;;  %v1616_v63 = vpop.f32.mrf.mxu2  ;;  %2353 = vst [vmem:[%s6290_s2 + $0x5f8] sm:$0xff] %v1722_v0 }
 0x28a   :  { %2350 = vst [vmem:[%s6290_s2 + $0x5e0] sm:$0xff] %v1563_v59  ;;  %v1669_v24 = vpop.f32.mrf.mxu3 }
 0x28b   :  { %2351 = vst [vmem:[%s6290_s2 + $0x5e8] sm:$0xff] %v1616_v63  ;;  %2717 = vmatmul.msk.f32.gmra.mxu0 %vm799_vm2, %v5565_v35 }
 0x28c   :  { %2352 = vst [vmem:[%s6290_s2 + $0x5f0] sm:$0xff] %v1669_v24  ;;  %2681 = vmatmul.msk.f32.gmra.mxu1 %vm799_vm2, %v5565_v35 }
 0x28e   :  { %2730 = vmatmul.msk.f32.vlgmr.msra.gmra.mxu2 %vm799_vm2, %v3244_v19 }
 0x28f   :  { %2742 = vmatmul.msk.f32.vlgmr.msra.gmra.mxu3 %vm799_vm2, %v3244_v19 }
 0x290   :  { %v1725_v54 = vpop.f32.mrf.mxu0 }
 0x291   :  { %v1566_v47 = vpop.f32.mrf.mxu1  ;;  %v1619_v9 = vpop.f32.mrf.mxu2  ;;  %2378 = vst [vmem:[%s6290_s2 + $0x6c0] sm:$0xff] %v1725_v54 }
 0x292   :  { %2375 = vst [vmem:[%s6290_s2 + $0x6a8] sm:$0xff] %v1566_v47  ;;  %v1672_v16 = vpop.f32.mrf.mxu3 }
 0x293   :  { %2376 = vst [vmem:[%s6290_s2 + $0x6b0] sm:$0xff] %v1619_v9  ;;  %2754 = vmatmul.msk.f32.vlgmr.msra.gmra.mxu0 %vm799_vm2, %v3244_v19 }
 0x294   :  { %2377 = vst [vmem:[%s6290_s2 + $0x6b8] sm:$0xff] %v1672_v16  ;;  %2718 = vmatmul.msk.f32.vlgmr.msra.gmra.mxu1 %vm799_vm2, %v3244_v19 }
 0x296   :  { %2731 = vmatmul.msk.f32.gmra.mxu2 %vm799_vm2, %v3245_v60 }
 0x297   :  { %2743 = vmatmul.msk.f32.gmra.mxu3 %vm799_vm2, %v3245_v60 }
 0x298   :  { %v1728_v62 = vpop.f32.mrf.mxu0 }
 0x299   :  { %v1569_v38 = vpop.f32.mrf.mxu1  ;;  %v1622_v18 = vpop.f32.mrf.mxu2  ;;  %2403 = vst [vmem:[%s6290_s2 + $0x788] sm:$0xff] %v1728_v62 }
 0x29a   :  { %2400 = vst [vmem:[%s6290_s2 + $0x770] sm:$0xff] %v1569_v38  ;;  %v1675_v53 = vpop.f32.mrf.mxu3 }
 0x29b   :  { %2401 = vst [vmem:[%s6290_s2 + $0x778] sm:$0xff] %v1622_v18  ;;  %2755 = vmatmul.msk.f32.gmra.mxu0 %vm799_vm2, %v3245_v60 }
 0x29c   :  { %2402 = vst [vmem:[%s6290_s2 + $0x780] sm:$0xff] %v1675_v53  ;;  %2719 = vmatmul.msk.f32.gmra.mxu1 %vm799_vm2, %v3245_v60 }
 0x29e   :  { %2732 = vmatmul.msk.f32.gmra.mxu2 %vm799_vm2, %v3246_v13 }
 0x29f   :  { %2744 = vmatmul.msk.f32.gmra.mxu3 %vm799_vm2, %v3246_v13 }
 0x2a0   :  { %v1731_v49 = vpop.f32.mrf.mxu0 }
 0x2a1   :  { %v1572_v39 = vpop.f32.mrf.mxu1  ;;  %v1625_v10 = vpop.f32.mrf.mxu2  ;;  %2428 = vst [vmem:[%s6290_s2 + $0x850] sm:$0xff] %v1731_v49 }
 0x2a2   :  { %2425 = vst [vmem:[%s6290_s2 + $0x838] sm:$0xff] %v1572_v39  ;;  %v1678_v11 = vpop.f32.mrf.mxu3 }
 0x2a3   :  { %2426 = vst [vmem:[%s6290_s2 + $0x840] sm:$0xff] %v1625_v10  ;;  %2756 = vmatmul.msk.f32.gmra.mxu0 %vm799_vm2, %v3246_v13 }
 0x2a4   :  { %2427 = vst [vmem:[%s6290_s2 + $0x848] sm:$0xff] %v1678_v11  ;;  %2720 = vmatmul.msk.f32.gmra.mxu1 %vm799_vm2, %v3246_v13 }
 0x2a6   :  { %2733 = vmatmul.msk.f32.gmra.mxu2 %vm799_vm2, %v3247_v22 }
 0x2a7   :  { %2745 = vmatmul.msk.f32.gmra.mxu3 %vm799_vm2, %v3247_v22 }
 0x2a8   :  { %v1734_v43 = vpop.f32.mrf.mxu0 }
 0x2a9   :  { %v1575_v28 = vpop.f32.mrf.mxu1  ;;  %v1628_v46 = vpop.f32.mrf.mxu2  ;;  %2453 = vst [vmem:[%s6290_s2 + $0x918] sm:$0xff] %v1734_v43 }
 0x2aa   :  { %2450 = vst [vmem:[%s6290_s2 + $0x900] sm:$0xff] %v1575_v28  ;;  %v1681_v12 = vpop.f32.mrf.mxu3 }
 0x2ab   :  { %2451 = vst [vmem:[%s6290_s2 + $0x908] sm:$0xff] %v1628_v46  ;;  %2757 = vmatmul.msk.f32.gmra.mxu0 %vm799_vm2, %v3247_v22 }
 0x2ac   :  { %2452 = vst [vmem:[%s6290_s2 + $0x910] sm:$0xff] %v1681_v12  ;;  %2721 = vmatmul.msk.f32.gmra.mxu1 %vm799_vm2, %v3247_v22 }
 0x2ae   :  { %2734 = vmatmul.msk.f32.gmra.mxu2 %vm799_vm2, %v3248_v50 }
 0x2af   :  { %2746 = vmatmul.msk.f32.gmra.mxu3 %vm799_vm2, %v3248_v50 }
 0x2b0   :  { %v1913_v45 = vpop.f32.mrf.mxu0 }
 0x2b1   :  { %v1754_v31 = vpop.f32.mrf.mxu1  ;;  %v1807_v57 = vpop.f32.mrf.mxu2  ;;  %2181 = vst [vmem:[%s6290_s2 + $0xa0] sm:$0xff] %v1913_v45 }
 0x2b2   :  { %2178 = vst [vmem:[%s6290_s2 + $0x88] sm:$0xff] %v1754_v31  ;;  %v1860_v33 = vpop.f32.mrf.mxu3 }
 0x2b3   :  { %2179 = vst [vmem:[%s6290_s2 + $0x90] sm:$0xff] %v1807_v57  ;;  %2758 = vmatmul.msk.f32.gmra.mxu0 %vm799_vm2, %v3248_v50 }
 0x2b4   :  { %2180 = vst [vmem:[%s6290_s2 + $0x98] sm:$0xff] %v1860_v33  ;;  %2722 = vmatmul.msk.f32.gmra.mxu1 %vm799_vm2, %v3248_v50 }
 0x2b6   :  { %2735 = vmatmul.msk.f32.gmra.mxu2 %vm799_vm2, %v3249_v27 }
 0x2b7   :  { %2747 = vmatmul.msk.f32.gmra.mxu3 %vm799_vm2, %v3249_v27 }
 0x2b8   :  { %v1916_v37 = vpop.f32.mrf.mxu0 }
 0x2b9   :  { %v1757_v14 = vpop.f32.mrf.mxu1  ;;  %v1810_v30 = vpop.f32.mrf.mxu2  ;;  %2207 = vst [vmem:[%s6290_s2 + $0x168] sm:$0xff] %v1916_v37 }
 0x2ba   :  { %2204 = vst [vmem:[%s6290_s2 + $0x150] sm:$0xff] %v1757_v14  ;;  %v1863_v55 = vpop.f32.mrf.mxu3 }
 0x2bb   :  { %2205 = vst [vmem:[%s6290_s2 + $0x158] sm:$0xff] %v1810_v30  ;;  %2759 = vmatmul.msk.f32.gmra.mxu0 %vm799_vm2, %v3249_v27 }
 0x2bc   :  { %2206 = vst [vmem:[%s6290_s2 + $0x160] sm:$0xff] %v1863_v55  ;;  %2723 = vmatmul.msk.f32.gmra.mxu1 %vm799_vm2, %v3249_v27 }
 0x2be   :  { %2736 = vmatmul.msk.f32.gmra.mxu2 %vm799_vm2, %v3250_v32 }
 0x2bf   :  { %2748 = vmatmul.msk.f32.gmra.mxu3 %vm799_vm2, %v3250_v32 }
 0x2c0   :  { %v1919_v1 = vpop.f32.mrf.mxu0 }
 0x2c1   :  { %v1760_v40 = vpop.f32.mrf.mxu1  ;;  %v1813_v23 = vpop.f32.mrf.mxu2  ;;  %2232 = vst [vmem:[%s6290_s2 + $0x230] sm:$0xff] %v1919_v1 }
 0x2c2   :  { %2229 = vst [vmem:[%s6290_s2 + $0x218] sm:$0xff] %v1760_v40  ;;  %v1866_v29 = vpop.f32.mrf.mxu3 }
 0x2c3   :  { %2230 = vst [vmem:[%s6290_s2 + $0x220] sm:$0xff] %v1813_v23  ;;  %2760 = vmatmul.msk.f32.gmra.mxu0 %vm799_vm2, %v3250_v32 }
 0x2c4   :  { %2231 = vst [vmem:[%s6290_s2 + $0x228] sm:$0xff] %v1866_v29  ;;  %2724 = vmatmul.msk.f32.gmra.mxu1 %vm799_vm2, %v3250_v32 }
 0x2c6   :  { %2737 = vmatmul.msk.f32.gmra.mxu2 %vm799_vm2, %v3251_v36 }
 0x2c7   :  { %2749 = vmatmul.msk.f32.gmra.mxu3 %vm799_vm2, %v3251_v36 }
 0x2c8   :  { %v1922_v26 = vpop.f32.mrf.mxu0 }
 0x2c9   :  { %v1763_v52 = vpop.f32.mrf.mxu1  ;;  %v1816_v42 = vpop.f32.mrf.mxu2  ;;  %2257 = vst [vmem:[%s6290_s2 + $0x2f8] sm:$0xff] %v1922_v26 }
 0x2ca   :  { %2254 = vst [vmem:[%s6290_s2 + $0x2e0] sm:$0xff] %v1763_v52  ;;  %v1869_v48 = vpop.f32.mrf.mxu3 }
 0x2cb   :  { %2255 = vst [vmem:[%s6290_s2 + $0x2e8] sm:$0xff] %v1816_v42  ;;  %2761 = vmatmul.msk.f32.gmra.mxu0 %vm799_vm2, %v3251_v36 }
 0x2cc   :  { %2256 = vst [vmem:[%s6290_s2 + $0x2f0] sm:$0xff] %v1869_v48  ;;  %2725 = vmatmul.msk.f32.gmra.mxu1 %vm799_vm2, %v3251_v36 }
 0x2ce   :  { %2738 = vmatmul.msk.f32.gmra.mxu2 %vm799_vm2, %v3252_v44 }
 0x2cf   :  { %2750 = vmatmul.msk.f32.gmra.mxu3 %vm799_vm2, %v3252_v44 }
 0x2d0   :  { %v1925_v6 = vpop.f32.mrf.mxu0 }
 0x2d1   :  { %v1766_v17 = vpop.f32.mrf.mxu1  ;;  %v1819_v51 = vpop.f32.mrf.mxu2  ;;  %2282 = vst [vmem:[%s6290_s2 + $0x3c0] sm:$0xff] %v1925_v6 }
 0x2d2   :  { %2279 = vst [vmem:[%s6290_s2 + $0x3a8] sm:$0xff] %v1766_v17  ;;  %v1872_v34 = vpop.f32.mrf.mxu3 }
 0x2d3   :  { %2280 = vst [vmem:[%s6290_s2 + $0x3b0] sm:$0xff] %v1819_v51  ;;  %2762 = vmatmul.msk.f32.gmra.mxu0 %vm799_vm2, %v3252_v44 }
 0x2d4   :  { %2281 = vst [vmem:[%s6290_s2 + $0x3b8] sm:$0xff] %v1872_v34  ;;  %2726 = vmatmul.msk.f32.gmra.mxu1 %vm799_vm2, %v3252_v44 }
 0x2d6   :  { %2739 = vmatmul.msk.f32.gmra.mxu2 %vm799_vm2, %v5515_v25 }
 0x2d7   :  { %2751 = vmatmul.msk.f32.gmra.mxu3 %vm799_vm2, %v5515_v25 }
 0x2d8   :  { %v1928_v21 = vpop.f32.mrf.mxu0 }
 0x2d9   :  { %v1769_v3 = vpop.f32.mrf.mxu1  ;;  %v1822_v7 = vpop.f32.mrf.mxu2  ;;  %2307 = vst [vmem:[%s6290_s2 + $0x488] sm:$0xff] %v1928_v21 }
 0x2da   :  { %2304 = vst [vmem:[%s6290_s2 + $0x470] sm:$0xff] %v1769_v3  ;;  %v1875_v2 = vpop.f32.mrf.mxu3 }
 0x2db   :  { %2305 = vst [vmem:[%s6290_s2 + $0x478] sm:$0xff] %v1822_v7  ;;  %2763 = vmatmul.msk.f32.gmra.mxu0 %vm799_vm2, %v5515_v25 }
 0x2dc   :  { %2306 = vst [vmem:[%s6290_s2 + $0x480] sm:$0xff] %v1875_v2  ;;  %2727 = vmatmul.msk.f32.gmra.mxu1 %vm799_vm2, %v5515_v25 }
 0x2de   :  { %2740 = vmatmul.msk.f32.gmra.mxu2 %vm799_vm2, %v5540_v20 }
 0x2df   :  { %2752 = vmatmul.msk.f32.gmra.mxu3 %vm799_vm2, %v5540_v20 }
 0x2e0   :  { %v1931_v41 = vpop.f32.mrf.mxu0 }
 0x2e1   :  { %v1772_v4 = vpop.f32.mrf.mxu1  ;;  %v1825_v56 = vpop.f32.mrf.mxu2  ;;  %2332 = vst [vmem:[%s6290_s2 + $0x550] sm:$0xff] %v1931_v41 }
 0x2e2   :  { %2329 = vst [vmem:[%s6290_s2 + $0x538] sm:$0xff] %v1772_v4  ;;  %v1878_v61 = vpop.f32.mrf.mxu3 }
 0x2e3   :  { %2330 = vst [vmem:[%s6290_s2 + $0x540] sm:$0xff] %v1825_v56  ;;  %2764 = vmatmul.msk.f32.gmra.mxu0 %vm799_vm2, %v5540_v20 }
 0x2e4   :  { %2331 = vst [vmem:[%s6290_s2 + $0x548] sm:$0xff] %v1878_v61  ;;  %2728 = vmatmul.msk.f32.gmra.mxu1 %vm799_vm2, %v5540_v20 }
 0x2e6   :  { %2741 = vmatmul.msk.f32.gmra.mxu2 %vm799_vm2, %v5565_v35 }
 0x2e7   :  { %2753 = vmatmul.msk.f32.gmra.mxu3 %vm799_vm2, %v5565_v35 }
 0x2e8   :  { %v1934_v25 = vpop.f32.mrf.mxu0 }
 0x2e9   :  { %v1775_v5 = vpop.f32.mrf.mxu1  ;;  %v1828_v15 = vpop.f32.mrf.mxu2  ;;  %2357 = vst [vmem:[%s6290_s2 + $0x618] sm:$0xff] %v1934_v25 }
 0x2ea   :  { %2354 = vst [vmem:[%s6290_s2 + $0x600] sm:$0xff] %v1775_v5  ;;  %v1881_v8 = vpop.f32.mrf.mxu3 }
 0x2eb   :  { %2355 = vst [vmem:[%s6290_s2 + $0x608] sm:$0xff] %v1828_v15  ;;  %2765 = vmatmul.msk.f32.gmra.mxu0 %vm799_vm2, %v5565_v35 }
 0x2ec   :  { %2356 = vst [vmem:[%s6290_s2 + $0x610] sm:$0xff] %v1881_v8  ;;  %2729 = vmatmul.msk.f32.gmra.mxu1 %vm799_vm2, %v5565_v35 }
 0x2f0   :  { %v1937_v20 = vpop.f32.mrf.mxu0 }
 0x2f1   :  { %v1778_v58 = vpop.f32.mrf.mxu1  ;;  %v1831_v0 = vpop.f32.mrf.mxu2  ;;  %2382 = vst [vmem:[%s6290_s2 + $0x6e0] sm:$0xff] %v1937_v20 }
 0x2f2   :  { %2379 = vst [vmem:[%s6290_s2 + $0x6c8] sm:$0xff] %v1778_v58  ;;  %v1884_v59 = vpop.f32.mrf.mxu3 }
 0x2f3   :  { %2380 = vst [vmem:[%s6290_s2 + $0x6d0] sm:$0xff] %v1831_v0 }
 0x2f4   :  { %2381 = vst [vmem:[%s6290_s2 + $0x6d8] sm:$0xff] %v1884_v59 }
 0x2f8   :  { %v1940_v35 = vpop.f32.mrf.mxu0 }
 0x2f9   :  { %v1781_v63 = vpop.f32.mrf.mxu1  ;;  %v1834_v24 = vpop.f32.mrf.mxu2  ;;  %2407 = vst [vmem:[%s6290_s2 + $0x7a8] sm:$0xff] %v1940_v35 }
 0x2fa   :  { %2404 = vst [vmem:[%s6290_s2 + $0x790] sm:$0xff] %v1781_v63  ;;  %v1887_v19 = vpop.f32.mrf.mxu3 }
 0x2fb   :  { %2405 = vst [vmem:[%s6290_s2 + $0x798] sm:$0xff] %v1834_v24 }
 0x2fc   :  { %2406 = vst [vmem:[%s6290_s2 + $0x7a0] sm:$0xff] %v1887_v19 }
 0x300   :  { %v1943_v54 = vpop.f32.mrf.mxu0 }
 0x301   :  { %v1784_v47 = vpop.f32.mrf.mxu1  ;;  %v1837_v9 = vpop.f32.mrf.mxu2  ;;  %2432 = vst [vmem:[%s6290_s2 + $0x870] sm:$0xff] %v1943_v54 }
 0x302   :  { %2429 = vst [vmem:[%s6290_s2 + $0x858] sm:$0xff] %v1784_v47  ;;  %v1890_v16 = vpop.f32.mrf.mxu3 }
 0x303   :  { %2430 = vst [vmem:[%s6290_s2 + $0x860] sm:$0xff] %v1837_v9 }
 0x304   :  { %2431 = vst [vmem:[%s6290_s2 + $0x868] sm:$0xff] %v1890_v16 }
 0x308   :  { %v1946_v60 = vpop.f32.mrf.mxu0 }
 0x309   :  { %v1787_v62 = vpop.f32.mrf.mxu1  ;;  %v1840_v38 = vpop.f32.mrf.mxu2  ;;  %2457 = vst [vmem:[%s6290_s2 + $0x938] sm:$0xff] %v1946_v60 }
 0x30a   :  { %2454 = vst [vmem:[%s6290_s2 + $0x920] sm:$0xff] %v1787_v62  ;;  %v1893_v18 = vpop.f32.mrf.mxu3 }
 0x30b   :  { %2455 = vst [vmem:[%s6290_s2 + $0x928] sm:$0xff] %v1840_v38 }
 0x30c   :  { %2456 = vst [vmem:[%s6290_s2 + $0x930] sm:$0xff] %v1893_v18 }
 0x310   :  { %v2125_v53 = vpop.f32.mrf.mxu0 }
 0x311   :  { %v1966_v13 = vpop.f32.mrf.mxu1  ;;  %v2019_v49 = vpop.f32.mrf.mxu2  ;;  %2186 = vst.msk [vmem:[%s6290_s2 + $0xc0] sm:$0xff] %vm2185_vm3, %v2125_v53 }
 0x312   :  { %2182 = vst [vmem:[%s6290_s2 + $0xa8] sm:$0xff] %v1966_v13  ;;  %v2072_v39 = vpop.f32.mrf.mxu3 }
 0x313   :  { %2183 = vst [vmem:[%s6290_s2 + $0xb0] sm:$0xff] %v2019_v49 }
 0x314   :  { %2184 = vst [vmem:[%s6290_s2 + $0xb8] sm:$0xff] %v2072_v39 }
 0x318   :  { %v2128_v10 = vpop.f32.mrf.mxu0 }
 0x319   :  { %v1969_v11 = vpop.f32.mrf.mxu1  ;;  %v2022_v22 = vpop.f32.mrf.mxu2  ;;  %2211 = vst.msk [vmem:[%s6290_s2 + $0x188] sm:$0xff] %vm2185_vm3, %v2128_v10 }
 0x31a   :  { %2208 = vst [vmem:[%s6290_s2 + $0x170] sm:$0xff] %v1969_v11  ;;  %v2075_v43 = vpop.f32.mrf.mxu3 }
 0x31b   :  { %2209 = vst [vmem:[%s6290_s2 + $0x178] sm:$0xff] %v2022_v22 }
 0x31c   :  { %2210 = vst [vmem:[%s6290_s2 + $0x180] sm:$0xff] %v2075_v43 }
 0x320   :  { %v2131_v28 = vpop.f32.mrf.mxu0 }
 0x321   :  { %v1972_v46 = vpop.f32.mrf.mxu1  ;;  %v2025_v12 = vpop.f32.mrf.mxu2  ;;  %2236 = vst.msk [vmem:[%s6290_s2 + $0x250] sm:$0xff] %vm2185_vm3, %v2131_v28 }
 0x322   :  { %2233 = vst [vmem:[%s6290_s2 + $0x238] sm:$0xff] %v1972_v46  ;;  %v2078_v50 = vpop.f32.mrf.mxu3 }
 0x323   :  { %2234 = vst [vmem:[%s6290_s2 + $0x240] sm:$0xff] %v2025_v12 }
 0x324   :  { %2235 = vst [vmem:[%s6290_s2 + $0x248] sm:$0xff] %v2078_v50 }
 0x328   :  { %v2134_v45 = vpop.f32.mrf.mxu0 }
 0x329   :  { %v1975_v31 = vpop.f32.mrf.mxu1  ;;  %v2028_v57 = vpop.f32.mrf.mxu2  ;;  %2261 = vst.msk [vmem:[%s6290_s2 + $0x318] sm:$0xff] %vm2185_vm3, %v2134_v45 }
 0x32a   :  { %2258 = vst [vmem:[%s6290_s2 + $0x300] sm:$0xff] %v1975_v31  ;;  %v2081_v33 = vpop.f32.mrf.mxu3 }
 0x32b   :  { %2259 = vst [vmem:[%s6290_s2 + $0x308] sm:$0xff] %v2028_v57 }
 0x32c   :  { %2260 = vst [vmem:[%s6290_s2 + $0x310] sm:$0xff] %v2081_v33 }
 0x330   :  { %v2137_v27 = vpop.f32.mrf.mxu0 }
 0x331   :  { %v1978_v37 = vpop.f32.mrf.mxu1  ;;  %v2031_v14 = vpop.f32.mrf.mxu2  ;;  %2286 = vst.msk [vmem:[%s6290_s2 + $0x3e0] sm:$0xff] %vm2185_vm3, %v2137_v27 }
 0x332   :  { %2283 = vst [vmem:[%s6290_s2 + $0x3c8] sm:$0xff] %v1978_v37  ;;  %v2084_v30 = vpop.f32.mrf.mxu3 }
 0x333   :  { %2284 = vst [vmem:[%s6290_s2 + $0x3d0] sm:$0xff] %v2031_v14 }
 0x334   :  { %2285 = vst [vmem:[%s6290_s2 + $0x3d8] sm:$0xff] %v2084_v30 }
 0x338   :  { %v2140_v55 = vpop.f32.mrf.mxu0 }
 0x339   :  { %v1981_v32 = vpop.f32.mrf.mxu1  ;;  %v2034_v1 = vpop.f32.mrf.mxu2  ;;  %2311 = vst.msk [vmem:[%s6290_s2 + $0x4a8] sm:$0xff] %vm2185_vm3, %v2140_v55 }
 0x33a   :  { %2308 = vst [vmem:[%s6290_s2 + $0x490] sm:$0xff] %v1981_v32  ;;  %v2087_v40 = vpop.f32.mrf.mxu3 }
 0x33b   :  { %2309 = vst [vmem:[%s6290_s2 + $0x498] sm:$0xff] %v2034_v1 }
 0x33c   :  { %2310 = vst [vmem:[%s6290_s2 + $0x4a0] sm:$0xff] %v2087_v40 }
 0x340   :  { %v2143_v23 = vpop.f32.mrf.mxu0 }
 0x341   :  { %v1984_v29 = vpop.f32.mrf.mxu1  ;;  %v2037_v36 = vpop.f32.mrf.mxu2  ;;  %2336 = vst.msk [vmem:[%s6290_s2 + $0x570] sm:$0xff] %vm2185_vm3, %v2143_v23 }
 0x342   :  { %2333 = vst [vmem:[%s6290_s2 + $0x558] sm:$0xff] %v1984_v29  ;;  %v2090_v26 = vpop.f32.mrf.mxu3 }
 0x343   :  { %2334 = vst [vmem:[%s6290_s2 + $0x560] sm:$0xff] %v2037_v36 }
 0x344   :  { %2335 = vst [vmem:[%s6290_s2 + $0x568] sm:$0xff] %v2090_v26 }
 0x348   :  { %v2146_v52 = vpop.f32.mrf.mxu0 }
 0x349   :  { %v1987_v42 = vpop.f32.mrf.mxu1  ;;  %v2040_v48 = vpop.f32.mrf.mxu2  ;;  %2361 = vst.msk [vmem:[%s6290_s2 + $0x638] sm:$0xff] %vm2185_vm3, %v2146_v52 }
 0x34a   :  { %2358 = vst [vmem:[%s6290_s2 + $0x620] sm:$0xff] %v1987_v42  ;;  %v2093_v44 = vpop.f32.mrf.mxu3 }
 0x34b   :  { %2359 = vst [vmem:[%s6290_s2 + $0x628] sm:$0xff] %v2040_v48 }
 0x34c   :  { %2360 = vst [vmem:[%s6290_s2 + $0x630] sm:$0xff] %v2093_v44 }
 0x350   :  { %v2149_v6 = vpop.f32.mrf.mxu0 }
 0x351   :  { %v1990_v17 = vpop.f32.mrf.mxu1  ;;  %v2043_v51 = vpop.f32.mrf.mxu2  ;;  %2386 = vst.msk [vmem:[%s6290_s2 + $0x700] sm:$0xff] %vm2185_vm3, %v2149_v6 }
 0x352   :  { %2383 = vst [vmem:[%s6290_s2 + $0x6e8] sm:$0xff] %v1990_v17  ;;  %v2096_v34 = vpop.f32.mrf.mxu3 }
 0x353   :  { %2384 = vst [vmem:[%s6290_s2 + $0x6f0] sm:$0xff] %v2043_v51 }
 0x354   :  { %2385 = vst [vmem:[%s6290_s2 + $0x6f8] sm:$0xff] %v2096_v34 }
 0x358   :  { %v2152_v21 = vpop.f32.mrf.mxu0 }
 0x359   :  { %v1993_v3 = vpop.f32.mrf.mxu1  ;;  %v2046_v7 = vpop.f32.mrf.mxu2  ;;  %2411 = vst.msk [vmem:[%s6290_s2 + $0x7c8] sm:$0xff] %vm2185_vm3, %v2152_v21 }
 0x35a   :  { %2408 = vst [vmem:[%s6290_s2 + $0x7b0] sm:$0xff] %v1993_v3  ;;  %v2099_v2 = vpop.f32.mrf.mxu3 }
 0x35b   :  { %2409 = vst [vmem:[%s6290_s2 + $0x7b8] sm:$0xff] %v2046_v7 }
 0x35c   :  { %2410 = vst [vmem:[%s6290_s2 + $0x7c0] sm:$0xff] %v2099_v2 }
 0x360   :  { %v2155_v41 = vpop.f32.mrf.mxu0 }
 0x361   :  { %v1996_v4 = vpop.f32.mrf.mxu1  ;;  %v2049_v56 = vpop.f32.mrf.mxu2  ;;  %2436 = vst.msk [vmem:[%s6290_s2 + $0x890] sm:$0xff] %vm2185_vm3, %v2155_v41 }
 0x362   :  { %2433 = vst [vmem:[%s6290_s2 + $0x878] sm:$0xff] %v1996_v4  ;;  %v2102_v61 = vpop.f32.mrf.mxu3 }
 0x363   :  { %2434 = vst [vmem:[%s6290_s2 + $0x880] sm:$0xff] %v2049_v56 }
 0x364   :  { %2435 = vst [vmem:[%s6290_s2 + $0x888] sm:$0xff] %v2102_v61 }
 0x368   :  { %v2158_v25 = vpop.f32.mrf.mxu0 }
 0x369   :  { %v1999_v5 = vpop.f32.mrf.mxu1  ;;  %v2052_v15 = vpop.f32.mrf.mxu2  ;;  %2461 = vst.msk [vmem:[%s6290_s2 + $0x958] sm:$0xff] %vm2185_vm3, %v2158_v25 }
 0x36a   :  { %2458 = vst [vmem:[%s6290_s2 + $0x940] sm:$0xff] %v1999_v5  ;;  %v2105_v8 = vpop.f32.mrf.mxu3 }
 0x36b   :  { %2459 = vst [vmem:[%s6290_s2 + $0x948] sm:$0xff] %v2052_v15 }
 0x36c   :  { %2460 = vst [vmem:[%s6290_s2 + $0x950] sm:$0xff] %v2105_v8 }

</bundles_post_ra>
